<compile_context>
chip_gen: v6e
topology: v6e:2x2x1
jax: 0.10.0
libtpu: 0.0.40
codegen_flags: <defaults>
</compile_context>

<pallas_src>
import functools
import numpy as np
import jax
import jax.numpy as jnp
from jax.experimental import pallas as pl
from jax.experimental.pallas import tpu as pltpu


def tmodule_kernel(x_ref, dftf_ref, dfti_ref, wri_ref, wconv_ref, bconv_ref,
                   out_ref, *, P, PP, FP, L, K, p_final):
    """One grid step = one batch element, all N series folded onto lanes.

    x_ref    : (P_pad, N*C)     time on sublanes, (series, channel) on lanes
    dftf_ref : (2*FP, P_pad)    stacked forward real DFT rows [cos ; -sin]
    dfti_ref : (PP, 2*FP)       inverse real DFT (ortho); columns [cos | -sin],
                                rows bake in the TCN left zero pad + align pad
    wri_ref  : (2, 2*FP, N*C)   complex weight stacked to match [xr ; xi]
    wconv_ref: (L, K*N*C, N*C)  im2col conv weights, kron(I_N, W_lk) blocks
    bconv_ref: (L, N*C)         biases tiled over N
    out_ref  : (p_final, N*C)
    """
    x = x_ref[...]                                                     # (P_pad, NC)

    # ---- FreNetwork: rfft -> complex weight -> irfft (norm='ortho') --------
    xri = jnp.dot(dftf_ref[...], x, preferred_element_type=jnp.float32)  # [xr ; xi]
    xir = pltpu.roll(xri, shift=FP, axis=0)                              # [xi ; xr]
    y = xri * wri_ref[0] + xir * wri_ref[1]                              # [yr ; yi]
    hp = jnp.dot(dfti_ref[...], y, preferred_element_type=jnp.float32)   # (PP, NC)

    res = hp[P:P + 1, :]               # last padded time step -> residual row

    # ---- TCN: L layers of (1,K) conv + ReLU, im2col over taps --------------
    # Activation keeps the fixed (PP, NC) shape; rows >= p_out are garbage
    # (finite) and never feed the valid rows of later layers.
    cur = hp
    for l in range(L):
        taps = [cur] + [pltpu.roll(cur, shift=PP - k, axis=0)            # row t -> row t+k
                        for k in range(1, K)]
        a = jnp.concatenate(taps, axis=1)                                 # (PP, K*NC)
        z = jnp.dot(a, wconv_ref[l], preferred_element_type=jnp.float32)  # (PP, NC)
        cur = jnp.maximum(z + bconv_ref[l:l + 1, :], 0.0)                 # ReLU; dropout=id

    out_ref[...] = (cur[0:p_final, :] + res).astype(out_ref.dtype)


def _make_constants(P, C, N, complex_weight, conv_weights, conv_biases, L, K):
    """Host-side constant construction (dense DFTs, stacked complex weight,
    im2col conv weights)."""
    F = P // 2 + 1
    FP = ((F + 7) // 8) * 8                 # padded half-spectrum rows (sublane aligned)
    PP = ((P + 1 + 7) // 8) * 8             # padded TCN time rows (incl. left zero pad)
    P_pad = ((P + 7) // 8) * 8              # padded input time rows
    NC = N * C

    t = np.arange(P)
    f = np.arange(F)
    scale = 1.0 / np.sqrt(P)

    # Forward real DFT, rows stacked as [cos ; -sin] (each half padded to FP rows).
    ang_f = 2.0 * np.pi * np.outer(f, t) / P                   # (F, P)
    dft_fwd = np.zeros((2 * FP, P_pad))
    dft_fwd[:F, :P] = np.cos(ang_f) * scale
    dft_fwd[FP:FP + F, :P] = -np.sin(ang_f) * scale

    # Inverse real DFT (ortho): a-weights for the half spectrum; columns
    # [cos | -sin]; rows realize the TCN left zero-pad (row 0) and the
    # sublane-alignment padding (rows P+1..PP-1).
    a = np.full((F,), 2.0)
    a[0] = 1.0
    if P % 2 == 0:
        a[-1] = 1.0
    ang_i = 2.0 * np.pi * np.outer(t, f) / P                   # (P, F)
    dft_inv = np.zeros((PP, 2 * FP))
    dft_inv[1:1 + P, :F] = np.cos(ang_i) * a[None, :] * scale
    dft_inv[1:1 + P, FP:FP + F] = -np.sin(ang_i) * a[None, :] * scale

    # Complex weight, tiled over N along lanes and stacked to match [xr ; xi]:
    #   y = xri * wA + roll(xri, FP) * wB  with wA=[wre;wre], wB=[-wim;wim].
    cw = np.asarray(complex_weight)                            # (C, 1, F, 2)
    wre = np.tile(cw[:, 0, :, 0].T, (1, N))                    # (F, NC)
    wim = np.tile(cw[:, 0, :, 1].T, (1, N))
    wA = np.zeros((2 * FP, NC)); wA[:F] = wre;  wA[FP:FP + F] = wre
    wB = np.zeros((2 * FP, NC)); wB[:F] = -wim; wB[FP:FP + F] = wim
    wri = np.stack([wA, wB], axis=0)                           # (2, 2*FP, NC)

    # TCN conv weights: (Co, Ci, 1, K) -> per (layer, tap) kron(I_N, W^T) block,
    # stacked over taps along the contraction axis -> (L, K*NC, NC).
    eye_n = np.eye(N)
    wconv = np.zeros((L, K * NC, NC))
    for l in range(L):
        w = np.asarray(conv_weights[l])[:, :, 0, :]            # (Co, Ci, K)
        for k in range(K):
            wconv[l, k * NC:(k + 1) * NC, :] = np.kron(eye_n, w[:, :, k].T)
    bconv = np.stack([np.tile(np.asarray(b), N) for b in conv_biases], axis=0)  # (L, NC)

    to = lambda z: jnp.asarray(z, jnp.float32)
    return (to(dft_fwd), to(dft_inv), to(wri), to(wconv), to(bconv)), FP, PP, P_pad


def tmodule_forward(h, complex_weight, conv_weights, conv_biases):
    """h: (B, N, P, C).  Returns (B, C, N, p_final) to match PyTorch."""
    B, N, P, C = h.shape
    L = len(conv_weights)
    K = conv_weights[0].shape[-1]
    NC = N * C
    p_final = (P + 1) - L * (K - 1)
    assert p_final >= 1

    (dftf, dfti, wri, wconv, bconv), FP, PP, P_pad = _make_constants(
        P, C, N, complex_weight, conv_weights, conv_biases, L, K)

    # (B, N, P, C) -> (B, P_pad, N*C): time on sublanes, N folded onto lanes.
    x2 = jnp.transpose(h.astype(jnp.float32), (0, 2, 1, 3)).reshape(B, P, NC)
    x2 = jnp.pad(x2, ((0, 0), (0, P_pad - P), (0, 0)))

    kernel = functools.partial(tmodule_kernel, P=P, PP=PP, FP=FP, L=L, K=K,
                               p_final=p_final)

    def const_spec(arr):
        nd = arr.ndim
        return pl.BlockSpec(arr.shape, lambda b, _nd=nd: (0,) * _nd)

    out = pl.pallas_call(
        kernel,
        out_shape=jax.ShapeDtypeStruct((B, p_final, NC), jnp.float32),
        grid_spec=pltpu.PrefetchScalarGridSpec(
            num_scalar_prefetch=0,
            grid=(B,),
            in_specs=[
                pl.BlockSpec((None, P_pad, NC), lambda b: (b, 0, 0)),
                const_spec(dftf),
                const_spec(dfti),
                const_spec(wri),
                const_spec(wconv),
                const_spec(bconv),
            ],
            out_specs=pl.BlockSpec((None, p_final, NC), lambda b: (b, 0, 0)),
        ),
        compiler_params=pltpu.CompilerParams(
            dimension_semantics=("parallel",)),
    )(x2, dftf, dfti, wri, wconv, bconv)

    # (B, p_final, N*C) -> PyTorch output layout (B, C, N, p_final)
    return jnp.transpose(out.reshape(B, p_final, N, C), (0, 3, 2, 1))


def reference_numpy(h, complex_weight, conv_weights, conv_biases, P, K):
    """Plain numpy reference with PyTorch semantics (eval mode)."""
    x = np.transpose(np.asarray(h, np.float64), (0, 3, 1, 2))             # (B,C,N,P)
    X = np.fft.rfft(x, axis=3, norm='ortho')
    cw = np.asarray(complex_weight, np.float64)
    t_bank = cw[..., 0] + 1j * cw[..., 1]                                 # (C,1,F)
    X = X * t_bank
    x1 = np.fft.irfft(X, n=P, axis=3, norm='ortho')
    xp = np.pad(x1, ((0, 0), (0, 0), (0, 0), (1, 0)))
    cur = xp
    for l in range(len(conv_weights)):
        W = np.asarray(conv_weights[l], np.float64)[:, :, 0, :]           # (Co,Ci,K)
        bb = np.asarray(conv_biases[l], np.float64)
        p_in = cur.shape[-1]
        p_out = p_in - (K - 1)
        out = np.zeros(cur.shape[:1] + (W.shape[0],) + cur.shape[2:3] + (p_out,))
        for t in range(p_out):
            out[..., t] = np.einsum('oik,bink->bon', W, cur[..., t:t + K])
        out = out + bb[None, :, None, None]
        cur = np.maximum(out, 0.0)
    return cur + xp[..., -1:]


if __name__ == "__main__":
    # Small shapes consistent with the module: d_model=C=32, num_patches=P=12,
    # TCN layer=3 -> kernel_size = int(P/3 + 1) = 5, output time length = 1.
    B, N, P, C = 2, 4, 12, 32
    L = 3
    K = int(P / L + 1)
    F = P // 2 + 1

    key = jax.random.PRNGKey(0)
    k_h, k_cw, *k_w = jax.random.split(key, 2 + 2 * L)

    h = jax.random.normal(k_h, (B, N, P, C), dtype=jnp.float32)
    # complex_weight ~ xavier-ish deterministic init, shape (C, 1, F, 2)
    complex_weight = jax.random.normal(k_cw, (C, 1, F, 2), dtype=jnp.float32) * 0.02

    # Three independent Conv2d(C, C, (1, K)) layers (deterministic init).
    conv_weights, conv_biases = [], []
    fan_in = C * K
    for l in range(L):
        conv_weights.append(
            jax.random.normal(k_w[2 * l], (C, C, 1, K), jnp.float32) / np.sqrt(fan_in))
        conv_biases.append(
            jax.random.uniform(k_w[2 * l + 1], (C,), jnp.float32,
                               minval=-0.1, maxval=0.1))

    out = tmodule_forward(h, complex_weight, conv_weights, conv_biases)
    out = jax.block_until_ready(out)

    ref = reference_numpy(np.asarray(h), np.asarray(complex_weight),
                          [np.asarray(w) for w in conv_weights],
                          [np.asarray(b) for b in conv_biases], P, K)

    assert out.shape == ref.shape, (out.shape, ref.shape)
    np.testing.assert_allclose(np.asarray(out), ref, atol=2e-4, rtol=2e-4)
    print("KERNEL_OK")
</pallas_src>

<mosaic_0001>
module attributes {stable_mosaic.version = 11 : i64} {
  func.func @tmodule_kernel(%arg0: i32, %arg1: memref<1x16x128xf32, #tpu.memory_space<vmem>>, %arg2: memref<16x16xf32, #tpu.memory_space<vmem>>, %arg3: memref<16x16xf32, #tpu.memory_space<vmem>>, %arg4: memref<2x16x128xf32, #tpu.memory_space<vmem>>, %arg5: memref<3x640x128xf32, #tpu.memory_space<vmem>>, %arg6: memref<3x128xf32, #tpu.memory_space<vmem>>, %arg7: memref<1x1x128xf32, #tpu.memory_space<vmem>>) attributes {dimension_semantics = [#tpu.dimension_semantics<parallel>], iteration_bounds = array<i64: 2>, scalar_prefetch = 0 : i64, scratch_operands = 0 : i64, tpu.core_type = #tpu.core_type<tc>, window_params = [{transform_indices = @transform_0, window_bounds = array<i64: 1, 16, 128>}, {pipeline_mode = #tpu.pipeline_mode<synchronous>, transform_indices = @transform_1, window_bounds = array<i64: 16, 16>}, {pipeline_mode = #tpu.pipeline_mode<synchronous>, transform_indices = @transform_2, window_bounds = array<i64: 16, 16>}, {pipeline_mode = #tpu.pipeline_mode<synchronous>, transform_indices = @transform_3, window_bounds = array<i64: 2, 16, 128>}, {pipeline_mode = #tpu.pipeline_mode<synchronous>, transform_indices = @transform_4, window_bounds = array<i64: 3, 640, 128>}, {pipeline_mode = #tpu.pipeline_mode<synchronous>, transform_indices = @transform_5, window_bounds = array<i64: 3, 128>}, {transform_indices = @transform_6, window_bounds = array<i64: 1, 1, 128>}]} {
    %c0 = arith.constant 0 : index
    %c0_0 = arith.constant 0 : index
    %c0_1 = arith.constant 0 : index
    %0 = vector.load %arg1[%c0, %c0_0, %c0_1] : memref<1x16x128xf32, #tpu.memory_space<vmem>>, vector<1x16x128xf32>
    %1 = vector.shape_cast %0 : vector<1x16x128xf32> to vector<16x128xf32>
    %c0_2 = arith.constant 0 : index
    %c0_3 = arith.constant 0 : index
    %2 = vector.load %arg2[%c0_2, %c0_3] : memref<16x16xf32, #tpu.memory_space<vmem>>, vector<16x16xf32>
    %cst = arith.constant dense<0.000000e+00> : vector<16x128xf32>
    %3 = tpu.matmul %2, %1, %cst {dimension_numbers = #tpu.dot_dimension_numbers<[1], [0], [0], [1], [0, 0, 1, 1], [], []>} : vector<16x16xf32>, vector<16x128xf32>, vector<16x128xf32> -> vector<16x128xf32>
    %c8_i32 = arith.constant 8 : i32
    %4 = tpu.dynamic_rotate %3 by %c8_i32 dim 0 : vector<16x128xf32>, i32 -> vector<16x128xf32>
    %c0_4 = arith.constant 0 : index
    %c0_5 = arith.constant 0 : index
    %c0_6 = arith.constant 0 : index
    %5 = vector.load %arg4[%c0_4, %c0_5, %c0_6] : memref<2x16x128xf32, #tpu.memory_space<vmem>>, vector<1x16x128xf32>
    %6 = vector.shape_cast %5 : vector<1x16x128xf32> to vector<16x128xf32>
    %7 = arith.mulf %3, %6 : vector<16x128xf32>
    %c1 = arith.constant 1 : index
    %c0_7 = arith.constant 0 : index
    %c0_8 = arith.constant 0 : index
    %8 = vector.load %arg4[%c1, %c0_7, %c0_8] : memref<2x16x128xf32, #tpu.memory_space<vmem>>, vector<1x16x128xf32>
    %9 = vector.shape_cast %8 : vector<1x16x128xf32> to vector<16x128xf32>
    %10 = arith.mulf %4, %9 : vector<16x128xf32>
    %11 = arith.addf %7, %10 : vector<16x128xf32>
    %c0_9 = arith.constant 0 : index
    %c0_10 = arith.constant 0 : index
    %12 = vector.load %arg3[%c0_9, %c0_10] : memref<16x16xf32, #tpu.memory_space<vmem>>, vector<16x16xf32>
    %cst_11 = arith.constant dense<0.000000e+00> : vector<16x128xf32>
    %13 = tpu.matmul %12, %11, %cst_11 {dimension_numbers = #tpu.dot_dimension_numbers<[1], [0], [0], [1], [0, 0, 1, 1], [], []>} : vector<16x16xf32>, vector<16x128xf32>, vector<16x128xf32> -> vector<16x128xf32>
    %14 = vector.extract_strided_slice %13 {offsets = [12, 0], sizes = [1, 128], strides = [1, 1]} : vector<16x128xf32> to vector<1x128xf32>
    %c15_i32 = arith.constant 15 : i32
    %15 = tpu.dynamic_rotate %13 by %c15_i32 dim 0 : vector<16x128xf32>, i32 -> vector<16x128xf32>
    %c14_i32 = arith.constant 14 : i32
    %16 = tpu.dynamic_rotate %13 by %c14_i32 dim 0 : vector<16x128xf32>, i32 -> vector<16x128xf32>
    %c13_i32 = arith.constant 13 : i32
    %17 = tpu.dynamic_rotate %13 by %c13_i32 dim 0 : vector<16x128xf32>, i32 -> vector<16x128xf32>
    %c12_i32 = arith.constant 12 : i32
    %18 = tpu.dynamic_rotate %13 by %c12_i32 dim 0 : vector<16x128xf32>, i32 -> vector<16x128xf32>
    %19 = tpu.concatenate %13, %15, %16, %17, %18 in 1 : vector<16x128xf32>, vector<16x128xf32>, vector<16x128xf32>, vector<16x128xf32>, vector<16x128xf32> -> vector<16x640xf32>
    %c0_12 = arith.constant 0 : index
    %c0_13 = arith.constant 0 : index
    %c0_14 = arith.constant 0 : index
    %20 = vector.load %arg5[%c0_12, %c0_13, %c0_14] : memref<3x640x128xf32, #tpu.memory_space<vmem>>, vector<1x640x128xf32>
    %21 = vector.shape_cast %20 : vector<1x640x128xf32> to vector<640x128xf32>
    %cst_15 = arith.constant dense<0.000000e+00> : vector<16x128xf32>
    %22 = tpu.matmul %19, %21, %cst_15 {dimension_numbers = #tpu.dot_dimension_numbers<[1], [0], [0], [1], [0, 0, 1, 1], [], []>} : vector<16x640xf32>, vector<640x128xf32>, vector<16x128xf32> -> vector<16x128xf32>
    %c0_16 = arith.constant 0 : index
    %c0_17 = arith.constant 0 : index
    %23 = vector.load %arg6[%c0_16, %c0_17] : memref<3x128xf32, #tpu.memory_space<vmem>>, vector<1x128xf32>
    %24 = vector.broadcast %23 : vector<1x128xf32> to vector<16x128xf32>
    %25 = arith.addf %22, %24 : vector<16x128xf32>
    %cst_18 = arith.constant 0.000000e+00 : f32
    %26 = vector.broadcast %cst_18 : f32 to vector<16x128xf32>
    %27 = arith.maximumf %25, %26 : vector<16x128xf32>
    %c15_i32_19 = arith.constant 15 : i32
    %28 = tpu.dynamic_rotate %27 by %c15_i32_19 dim 0 : vector<16x128xf32>, i32 -> vector<16x128xf32>
    %c14_i32_20 = arith.constant 14 : i32
    %29 = tpu.dynamic_rotate %27 by %c14_i32_20 dim 0 : vector<16x128xf32>, i32 -> vector<16x128xf32>
    %c13_i32_21 = arith.constant 13 : i32
    %30 = tpu.dynamic_rotate %27 by %c13_i32_21 dim 0 : vector<16x128xf32>, i32 -> vector<16x128xf32>
    %c12_i32_22 = arith.constant 12 : i32
    %31 = tpu.dynamic_rotate %27 by %c12_i32_22 dim 0 : vector<16x128xf32>, i32 -> vector<16x128xf32>
    %32 = tpu.concatenate %27, %28, %29, %30, %31 in 1 : vector<16x128xf32>, vector<16x128xf32>, vector<16x128xf32>, vector<16x128xf32>, vector<16x128xf32> -> vector<16x640xf32>
    %c1_23 = arith.constant 1 : index
    %c0_24 = arith.constant 0 : index
    %c0_25 = arith.constant 0 : index
    %33 = vector.load %arg5[%c1_23, %c0_24, %c0_25] : memref<3x640x128xf32, #tpu.memory_space<vmem>>, vector<1x640x128xf32>
    %34 = vector.shape_cast %33 : vector<1x640x128xf32> to vector<640x128xf32>
    %cst_26 = arith.constant dense<0.000000e+00> : vector<16x128xf32>
    %35 = tpu.matmul %32, %34, %cst_26 {dimension_numbers = #tpu.dot_dimension_numbers<[1], [0], [0], [1], [0, 0, 1, 1], [], []>} : vector<16x640xf32>, vector<640x128xf32>, vector<16x128xf32> -> vector<16x128xf32>
    %c1_27 = arith.constant 1 : index
    %c0_28 = arith.constant 0 : index
    %36 = vector.load %arg6[%c1_27, %c0_28] : memref<3x128xf32, #tpu.memory_space<vmem>>, vector<1x128xf32>
    %37 = vector.broadcast %36 : vector<1x128xf32> to vector<16x128xf32>
    %38 = arith.addf %35, %37 : vector<16x128xf32>
    %cst_29 = arith.constant 0.000000e+00 : f32
    %39 = vector.broadcast %cst_29 : f32 to vector<16x128xf32>
    %40 = arith.maximumf %38, %39 : vector<16x128xf32>
    %c15_i32_30 = arith.constant 15 : i32
    %41 = tpu.dynamic_rotate %40 by %c15_i32_30 dim 0 : vector<16x128xf32>, i32 -> vector<16x128xf32>
    %c14_i32_31 = arith.constant 14 : i32
    %42 = tpu.dynamic_rotate %40 by %c14_i32_31 dim 0 : vector<16x128xf32>, i32 -> vector<16x128xf32>
    %c13_i32_32 = arith.constant 13 : i32
    %43 = tpu.dynamic_rotate %40 by %c13_i32_32 dim 0 : vector<16x128xf32>, i32 -> vector<16x128xf32>
    %c12_i32_33 = arith.constant 12 : i32
    %44 = tpu.dynamic_rotate %40 by %c12_i32_33 dim 0 : vector<16x128xf32>, i32 -> vector<16x128xf32>
    %45 = tpu.concatenate %40, %41, %42, %43, %44 in 1 : vector<16x128xf32>, vector<16x128xf32>, vector<16x128xf32>, vector<16x128xf32>, vector<16x128xf32> -> vector<16x640xf32>
    %c2 = arith.constant 2 : index
    %c0_34 = arith.constant 0 : index
    %c0_35 = arith.constant 0 : index
    %46 = vector.load %arg5[%c2, %c0_34, %c0_35] : memref<3x640x128xf32, #tpu.memory_space<vmem>>, vector<1x640x128xf32>
    %47 = vector.shape_cast %46 : vector<1x640x128xf32> to vector<640x128xf32>
    %cst_36 = arith.constant dense<0.000000e+00> : vector<16x128xf32>
    %48 = tpu.matmul %45, %47, %cst_36 {dimension_numbers = #tpu.dot_dimension_numbers<[1], [0], [0], [1], [0, 0, 1, 1], [], []>} : vector<16x640xf32>, vector<640x128xf32>, vector<16x128xf32> -> vector<16x128xf32>
    %c2_37 = arith.constant 2 : index
    %c0_38 = arith.constant 0 : index
    %49 = vector.load %arg6[%c2_37, %c0_38] : memref<3x128xf32, #tpu.memory_space<vmem>>, vector<1x128xf32>
    %50 = vector.broadcast %49 : vector<1x128xf32> to vector<16x128xf32>
    %51 = arith.addf %48, %50 : vector<16x128xf32>
    %cst_39 = arith.constant 0.000000e+00 : f32
    %52 = vector.broadcast %cst_39 : f32 to vector<16x128xf32>
    %53 = arith.maximumf %51, %52 : vector<16x128xf32>
    %54 = vector.extract_strided_slice %53 {offsets = [0, 0], sizes = [1, 128], strides = [1, 1]} : vector<16x128xf32> to vector<1x128xf32>
    %55 = arith.addf %54, %14 : vector<1x128xf32>
    %c0_40 = arith.constant 0 : index
    %c0_41 = arith.constant 0 : index
    %c0_42 = arith.constant 0 : index
    %56 = vector.load %arg7[%c0_40, %c0_41, %c0_42] : memref<1x1x128xf32, #tpu.memory_space<vmem>>, vector<1x1x128xf32>
    %57 = vector.shape_cast %56 : vector<1x1x128xf32> to vector<1x128xf32>
    %58 = vector.shape_cast %55 : vector<1x128xf32> to vector<1x1x128xf32>
    tpu.vector_store %arg7[%c0_40, %c0_41, %c0_42], %58 {strides = array<i32>} : memref<1x1x128xf32, #tpu.memory_space<vmem>>, vector<1x1x128xf32>,
    return
  }
  func.func @transform_0(%arg0: i32) -> (i32, i32, i32) {
    %c0_i32 = arith.constant 0 : i32
    %c0_i32_0 = arith.constant 0 : i32
    %c0_i32_1 = arith.constant 0 : i32
    return %arg0, %c0_i32, %c0_i32_0 : i32, i32, i32
  }
  func.func @transform_1(%arg0: i32) -> (i32, i32) {
    %c0_i32 = arith.constant 0 : i32
    %c0_i32_0 = arith.constant 0 : i32
    %c0_i32_1 = arith.constant 0 : i32
    return %c0_i32, %c0_i32_0 : i32, i32
  }
  func.func @transform_2(%arg0: i32) -> (i32, i32) {
    %c0_i32 = arith.constant 0 : i32
    %c0_i32_0 = arith.constant 0 : i32
    %c0_i32_1 = arith.constant 0 : i32
    return %c0_i32, %c0_i32_0 : i32, i32
  }
  func.func @transform_3(%arg0: i32) -> (i32, i32, i32) {
    %c0_i32 = arith.constant 0 : i32
    %c0_i32_0 = arith.constant 0 : i32
    %c0_i32_1 = arith.constant 0 : i32
    %c0_i32_2 = arith.constant 0 : i32
    return %c0_i32, %c0_i32_0, %c0_i32_1 : i32, i32, i32
  }
  func.func @transform_4(%arg0: i32) -> (i32, i32, i32) {
    %c0_i32 = arith.constant 0 : i32
    %c0_i32_0 = arith.constant 0 : i32
    %c0_i32_1 = arith.constant 0 : i32
    %c0_i32_2 = arith.constant 0 : i32
    return %c0_i32, %c0_i32_0, %c0_i32_1 : i32, i32, i32
  }
  func.func @transform_5(%arg0: i32) -> (i32, i32) {
    %c0_i32 = arith.constant 0 : i32
    %c0_i32_0 = arith.constant 0 : i32
    %c0_i32_1 = arith.constant 0 : i32
    return %c0_i32, %c0_i32_0 : i32, i32
  }
  func.func @transform_6(%arg0: i32) -> (i32, i32, i32) {
    %c0_i32 = arith.constant 0 : i32
    %c0_i32_0 = arith.constant 0 : i32
    %c0_i32_1 = arith.constant 0 : i32
    return %arg0, %c0_i32, %c0_i32_0 : i32, i32, i32
  }
}

</mosaic_0001>

<bundles_post_ra>
// kernel: tpu_custom_call.1
= control target key start
LH: loop header
LB: loop body
LE: loop exit
PB: predicated region body
PF: predicated region fallthrough
CT: control target
= control target key end

     0   :  { %11 = vsyncpa [#allocation3], 0  ;;  %s2708_s0 = inlined_call_operand.hbm [shape: f32[2,16,128], index: 0, kind: input, shape index: {}]   ;;  %s2709_s1 = inlined_call_operand.hbm [shape: f32[16,16], index: 1, kind: input, shape index: {}]   ;;  %s2710_s2 = inlined_call_operand.hbm [shape: f32[16,16], index: 2, kind: input, shape index: {}]   ;;  %s2711_s3 = inlined_call_operand.hbm [shape: f32[2,16,128], index: 3, kind: input, shape index: {}]   ;;  %s2712_s4 = inlined_call_operand.hbm [shape: f32[3,640,128], index: 4, kind: input, shape index: {}]   ;;  %s2713_s5 = inlined_call_operand.vmem [shape: f32[3,128], index: 5, kind: input, shape index: {}]   ;;  %s2714_s6 = inlined_call_operand.hbm [shape: f32[2,1,128], index: 6, kind: output, shape index: {}]  }
   0x1   :  { %13 = vsyncpa [#allocation3 + $0x1], 0 }
   0x2   :  { %14 = vsyncpa [#allocation6], 0 }
   0x3   :  { %15 = vsyncpa [#allocation9], 0 }
   0x4   :  { %16 = vsyncpa [#allocation4], 0 }
   0x5   :  { %18 = vsyncpa [#allocation4 + $0x1], 0  ;;  %s2391_s21 = smov 0   ;;  %s2393_s22 = smov 0  }
   0x6   :  { %s2395_s23 = smov 0   ;;  %s2397_s24 = smov 0  }
   0x7 LB: > { %s2412_s25 = sadd.s32 4294967295, %s2346_s24   ;;  %s1617_s26 = sadd.s32 4294967294, %s2346_s24   ;;  %s2346_s24 = sphi %s2397_s24, %s2741_s24   ;;  %s2342_s23 = sphi %s2395_s23, %s2740_s23   ;;  %s2338_s22 = sphi %s2393_s22, %s2739_s22   ;;  %s2334_s21 = sphi %s2391_s21, %s2738_s21  }
   0x8   : > { %p44_p0 = scmp.ne.s32.totalorder %s2338_s22, %s2334_s21  ;;  %p2715_p1 = scmp.eq.s32.totalorder %s2412_s25, 0 }
   0x9   : > { %p173_p2 = scmp.eq.s32.totalorder %s2412_s25, 1  ;;  %p179_p3 = scmp.eq.s32.totalorder %s1617_s26, 1 }
   0xa   : > { %p2421_p4 = por %p2715_p1, %p44_p0  ;;  %p1618_p5 = scmp.ge.s32.totalorder %s2346_s24, 1 }
   0xb   : > { %p2426_p6 = por %p179_p3, %p44_p0  ;;  %p186_p7 = scmp.lt.s32.totalorder %s2346_s24, 3 }
   0xc   : > { %s2721_s27 = scalar_select %p2421_p4, 1, 0 }
   0xd   : > { %s2722_s28 = scalar_select %p2426_p6, 1, 0 }
   0xe   : > { %p2431_p8 = pnand %p1618_p5, %p186_p7  ;;  %s2348_s30 = smov [#allocation5]  }
   0xf   : > { %s198_s7 = sshll.u32 %s2348_s30, 4  ;;  %s2349_s9 = smov [#allocation8]   ;;  %s199_s7 = int_to_ptr.vmem [resolvable:$true] %s198_s7 }
  0x10   : > { %s2723_s29 = scalar_select %p2431_p8, 1, 0 }
  0x11   : > { %p2073_p9 = pneg %p2431_p8  ;;  %s224_s10 = sshll.u32 %s2349_s9, 4  ;;  %s225_s10 = int_to_ptr.vmem [resolvable:$true] %s224_s10 }
  0x12   : > { %s2350_s11 = smov [#allocation7]   ;;  %s2153_s13 = scalar_lea.vmem %s199_s7, 256 }
  0x13   : > { %p2440_p11 = pnand %p2073_p9, %p2715_p1  ;;  %s211_s12 = sshll.u32 %s2350_s11, 4  ;;  %s212_s12 = int_to_ptr.vmem [resolvable:$true] %s211_s12 }
  0x14   : > { %p2154_p13 = scmp.ne.s32.totalorder %s199_s7, %s2153_s13  ;;  %p2161_p5 = scmp.lt.s32.totalorder %s199_s7, %s199_s7 }
  0x15   : > { %p2144_p12 = pneg %p2440_p11  ;;  %p2162_p7 = scmp.lt.s32.totalorder %s2153_s13, %s2153_s13 }
  0x17   : > { %p2156_p0 = pnand %p2154_p13, %p2144_p12  ;;  %p2163_p9 = por %p2162_p7, %p2161_p5 }
  0x19   : > { %p2157_p3 = pneg %p2156_p0 }
  0x1b   : > { %p2164_p10 = pnand %p2163_p9, %p2157_p3 }
  0x1d   : > { %2167 = shalt.err (!%p2164_p10)
}
  0x1e   : > { %s2716_s14 = smov 128   ;;  %s2717_s15 = smov 8  }
  0x1f   : > { %2076 = dma.hbm_to_vmem [thread:$0]  (!%p2440_p11), %s2709_s1, 256, %s199_s7, [#allocation6], %s2716_s14, %s2716_s14, %s2717_s15  }
  0x20   : > { %s2179_s18 = scalar_lea.vmem %s225_s10, 512  ;;  %p2187_p3 = scmp.lt.s32.totalorder %s225_s10, %s225_s10 }
  0x21   : > { %p2180_p13 = scmp.ne.s32.totalorder %s225_s10, %s2179_s18  ;;  %p2188_p10 = scmp.lt.s32.totalorder %s2179_s18, %s2179_s18 }
  0x23   : > { %p2182_p0 = pnand %p2180_p13, %p2144_p12  ;;  %p2189_p7 = por %p2188_p10, %p2187_p3 }
  0x25   : > { %p2183_p5 = pneg %p2182_p0 }
  0x27   : > { %p2190_p9 = pnand %p2189_p7, %p2183_p5 }
  0x29   : > { %2193 = shalt.err (!%p2190_p9)
}
  0x2a   : > { %2082 = dma.hbm_to_vmem [thread:$0]  (!%p2440_p11), %s2711_s3, 512, %s225_s10, [#allocation9], %s2716_s14, %s2716_s14, %s2717_s15  }
  0x2b   : > { %s2205_s26 = scalar_lea.vmem %s212_s12, 256  ;;  %p2213_p3 = scmp.lt.s32.totalorder %s212_s12, %s212_s12 }
  0x2c   : > { %p2206_p1 = scmp.ne.s32.totalorder %s212_s12, %s2205_s26  ;;  %p2214_p5 = scmp.lt.s32.totalorder %s2205_s26, %s2205_s26 }
  0x2e   : > { %p2208_p13 = pnand %p2206_p1, %p2144_p12  ;;  %p2215_p10 = por %p2214_p5, %p2213_p3 }
  0x30   : > { %p2209_p0 = pneg %p2208_p13 }
  0x32   : > { %p2216_p7 = pnand %p2215_p10, %p2209_p0 }
  0x34   : > { %2219 = shalt.err (!%p2216_p7)
}
  0x35   : > { %2079 = dma.hbm_to_vmem [thread:$0]  (!%p2440_p11), %s2710_s2, 256, %s212_s12, [#allocation6], %s2716_s14, %s2716_s14, %s2717_s15  }
  0x36   : > { %s2353_s9 = smov [#allocation10]  }
  0x37   : > { %s237_s10 = sshll.u32 %s2353_s9, 4  ;;  %s238_s10 = int_to_ptr.vmem [resolvable:$true] %s237_s10 }
  0x38   : > { %s2231_s11 = scalar_lea.vmem %s238_s10, 30720  ;;  %p2239_p0 = scmp.lt.s32.totalorder %s238_s10, %s238_s10 }
  0x39   : > { %p2232_p1 = scmp.ne.s32.totalorder %s238_s10, %s2231_s11  ;;  %p2240_p3 = scmp.lt.s32.totalorder %s2231_s11, %s2231_s11 }
  0x3b   : > { %p2234_p9 = pnand %p2232_p1, %p2144_p12  ;;  %p2241_p5 = por %p2240_p3, %p2239_p0 }
  0x3d   : > { %p2235_p13 = pneg %p2234_p9 }
  0x3f   : > { %p2242_p10 = pnand %p2241_p5, %p2235_p13 }
  0x41   : > { %2245 = shalt.err (!%p2242_p10)
}
  0x42   : > { %2085 = dma.hbm_to_vmem [thread:$0]  (!%p2440_p11), %s2712_s4, 30720, %s238_s10, [#allocation9], %s2716_s14, %s2716_s14, %s2717_s15  }
  0x43   : > { %s2491_s16 = sadd.s32 1, %s2346_s24   ;;  %s31_s8 = sadd.s32 1, %s2342_s23 }
  0x44   : > { %s28_s17 = ssub.s32 %s2346_s24, %s2491_s16  ;;  %p38_p12 = scmp.ne.s32.totalorder %s2342_s23, %s2338_s22 }
  0x45   : > { %p29_p7 = scmp.eq.s32.totalorder %s28_s17, 0  ;;  %p39_p1 = scmp.eq.s32.totalorder %s2346_s24, 0 }
  0x46   : > { %p2501_p9 = por %p173_p2, %p38_p12  ;;  %p2098_p13 = scmp.lt.s32.totalorder %s2346_s24, 2 }
  0x47   : > { %s2507_s19 = scalar_select %p29_p7, %s2342_s23, %s31_s8  }
  0x48   : > { %s2725_s18 = scalar_select %p2501_p9, 1, 0 }
  0x49   : > { %p40_p0 = por %p39_p1, %p38_p12  ;;  %s254_s20 = sand.u32 1, %s2342_s23  }
  0x4a   : > { %s1624_s26 = sshll.u32 %s254_s20, 4  ;;  %s1643_s30 = sshll.u32 %s2346_s24, 8 }
  0x4b   : > { %s2514_s10 = scalar_lea.hbm %s2708_s0, %s1643_s30  ;;  %s258_s11 = scalar_lea.vmem [#allocation2], %s1624_s26 }
  0x4c   : > { %s265_s12 = sshll.u32 %s258_s11, 4  ;;  %p2518_p2 = pnand %p2098_p13, %p40_p0  ;;  %s2516_s12 = int_to_ptr.vmem [resolvable:$true] %s265_s12 }
  0x4d   : > { %s2522_s8 = scalar_lea.sflag [#allocation3], %s254_s20  ;;  %s2246_s17 = scalar_lea.hbm %s2514_s10, 256 }
  0x4e   : > { %p2247_p11 = scmp.ne.s32.totalorder %s2514_s10, %s2246_s17  ;;  %p2248_p3 = pneg %p2518_p2 }
  0x4f   : > { %s2251_s26 = scalar_lea.hbm %s2708_s0, 512  ;;  %p2252_p12 = scmp.lt.s32.totalorder %s2514_s10, %s2708_s0 }
  0x50   : > { %p2249_p5 = pnand %p2248_p3, %p2247_p11  ;;  %p2253_p7 = scmp.lt.s32.totalorder %s2251_s26, %s2246_s17 }
  0x52   : > { %p2250_p10 = pneg %p2249_p5  ;;  %p2254_p1 = por %p2253_p7, %p2252_p12 }
  0x54   : > { %p2255_p13 = pnand %p2254_p1, %p2250_p10 }
  0x56   : > { %2258 = shalt.err (!%p2255_p13)
}
  0x57   : > { %s2259_s20 = scalar_lea.vmem %s2516_s12, 256  ;;  %s2354_s14 = smov [#allocation2]  }
  0x58   : > { %p2260_p0 = scmp.ne.s32.totalorder %s2516_s12, %s2259_s20  ;;  %s2264_s15 = sshll.u32 %s2354_s14, 4  ;;  %s2265_s15 = int_to_ptr.vmem [resolvable:$false] %s2264_s15 }
  0x59   : > { %s2266_s30 = scalar_lea.vmem %s2265_s15, 512  ;;  %p2267_p5 = scmp.lt.s32.totalorder %s2516_s12, %s2265_s15 }
  0x5a   : > { %p2262_p6 = pnand %p2260_p0, %p2248_p3  ;;  %p2268_p9 = scmp.lt.s32.totalorder %s2266_s30, %s2259_s20 }
  0x5c   : > { %p2263_p11 = pneg %p2262_p6  ;;  %p2269_p4 = por %p2268_p9, %p2267_p5 }
  0x5e   : > { %p2270_p8 = pnand %p2269_p4, %p2263_p11 }
  0x60   : > { %2273 = shalt.err (!%p2270_p8)
}
  0x61   : > { %s2727_s17 = smov 8   ;;  %s2728_s7 = smov 128  }
  0x62   : > { %2089 = dma.hbm_to_vmem [thread:$0]  (!%p2518_p2), %s2514_s10, 256, %s2516_s12, %s2522_s8, %s2728_s7, %s2728_s7, %s2727_s17  }
  0x63   : > { %p2729_p6 = scmp.ne.s32.totalorder %s2723_s29, 0 }
  0x64   : > { %s2549_s14 = sand.u32 (!%p2729_p6), 1, %s2338_s22   ;;  %p2730_p4 = scmp.ne.s32.totalorder (!%p2729_p6), %s2721_s27, 0 }
  0x65   : > { %277 = sbr.rel (%p2729_p6) target bundleno = 1236 (0x4d4), region = 44  ;;  %s1628_s15 = sshll.u32 (!%p2729_p6), %s2549_s14, 4 }
  0x66   : > { %s280_s26 = scalar_lea.sflag (!%p2729_p6), [#allocation3], %s2549_s14  ;;  %s283_s9 = scalar_lea.vmem (!%p2729_p6), [#allocation2], %s1628_s15 }
  0x6a   : > { %2317 = dma.done.wait (%p2730_p4), %s280_s26, 256  }
  0x6b   : > { %2319 = vsyncadd (%p2730_p4), %s280_s26, 4294967040  ;;  %p2731_p8 = scmp.eq.s32.totalorder %s2412_s25, 0 }
  0x6d   : > { %2321 = dma.done.wait (%p2731_p8), [#allocation6], 512   ;;  %p2732_p9 = pmov %p2731_p8 }
  0x6e   : > { %p2733_p2 = pmov %p2731_p8 }
  0x6f   : > { %2323 = vsyncadd (%p2732_p9), [#allocation6], 4294966784 }
  0x70   : > { %2325 = dma.done.wait (%p2733_p2), [#allocation9], 31232   ;;  %p2734_p3 = pmov %p2733_p2 }
  0x71   : > { %vm331_vm0 = vcmask 130048   ;;  %v328_v0 = vld [vmem:[%s283_s9 + $0x8] sm:$0xff]  ;;  %v327_v1 = vld [vmem:[%s283_s9] sm:$0xff]  ;;  %s1640_s11 = sshll.u32 %s2412_s25, 4  ;;  %s326_s20 = scalar_lea.vmem [#allocation11], %s2549_s14 }
  0x72   : > { %2327 = vsyncadd (%p2734_p3), [#allocation9], 4294936064  ;;  %v329_v2 = vld [vmem:[#allocation5] sm:$0xff]  ;;  %1934 = vmatprep.subr.mxu1 %v328_v0  ;;  %v330_v3 = vld [vmem:[#allocation5 + $0x8] sm:$0xff]  ;;  %s1513_s30 = sshll.u32 %s326_s20, 4  ;;  %s1511_s15 = scalar_lea.hbm %s2714_s6, %s1640_s11  ;;  %s1514_s30 = int_to_ptr.vmem [resolvable:$true] %s1513_s30 }
  0x73   : > { %1938 = vmatprep.mubr.msk.f32.mxu1 %vm331_vm0, %v329_v2  ;;  %1935 = vmatpush3.msra.mxu1 %v328_v0  ;;  %v424_v4 = vld [vmem:[#allocation7] sm:$0xff]  ;;  %v560_v5 = vld [vmem:[#allocation10 + $0xf8] sm:$0xff]  ;;  %v558_v9 = vld [vmem:[#allocation10 + $0xe8] sm:$0xff]  ;;  %s1501_s26 = scalar_lea.sflag [#allocation4], %s2549_s14  ;;  %s2274_s9 = scalar_lea.vmem %s1514_s30, 16 }
  0x74   : > { %1936 = vmatprep.subr.mxu1 %v327_v1  ;;  %v544_v6 = vld [vmem:[#allocation10 + $0x78] sm:$0xff]  ;;  %1652 = vmatprep.subr.mxu0 %v560_v5  ;;  %v559_v7 = vld [vmem:[#allocation10 + $0xf0] sm:$0xff]  ;;  %v542_v10 = vld [vmem:[#allocation10 + $0x68] sm:$0xff]  ;;  %p2275_p10 = scmp.ne.s32.totalorder %s1514_s30, %s2274_s9  ;;  %p2735_p12 = scmp.ne.s32.totalorder %s2725_s18, 0 }
  0x75   : > { %1937 = vmatpush3.msra.mxu1 %v327_v1  ;;  %v543_v8 = vld [vmem:[#allocation10 + $0x70] sm:$0xff]  ;;  %1653 = vmatpush3.msra.mxu0 %v544_v6  ;;  %v557_v11 = vld [vmem:[#allocation10 + $0xe0] sm:$0xff]  ;;  %v556_v13 = vld [vmem:[#allocation10 + $0xd8] sm:$0xff]  ;;  %s2355_s27 = smov [#allocation11]  }
  0x76   : > { %1939 = vmatmul.mubr.msk.f32.vlgmr.msra.gmra.mxu1 %vm331_vm0, %v330_v3  ;;  %1654 = vmatprep.subr.mxu0 %v559_v7  ;;  %v541_v12 = vld [vmem:[#allocation10 + $0x60] sm:$0xff]  ;;  %v540_v14 = vld [vmem:[#allocation10 + $0x58] sm:$0xff]  ;;  %v555_v15 = vld [vmem:[#allocation10 + $0xd0] sm:$0xff]  ;;  %p2276_p7 = pnand %p2275_p10, %p2735_p12  ;;  %s2278_s29 = sshll.u32 %s2355_s27, 4  ;;  %s2279_s29 = int_to_ptr.vmem [resolvable:$false] %s2278_s29 }
  0x77   : > { %1945 = vmatprep.mubr.msk.f32.mxu1 %vm331_vm0, %v424_v4  ;;  %1655 = vmatpush3.msra.mxu0 %v543_v8  ;;  %v539_v16 = vld [vmem:[#allocation10 + $0x50] sm:$0xff]  ;;  %v554_v17 = vld [vmem:[#allocation10 + $0xc8] sm:$0xff]  ;;  %v553_v19 = vld [vmem:[#allocation10 + $0xc0] sm:$0xff]  ;;  %s2280_s25 = scalar_lea.vmem %s2279_s29, 32  ;;  %p2281_p13 = scmp.lt.s32.totalorder %s1514_s30, %s2279_s29 }
  0x78   : > { %1656 = vmatprep.subr.mxu0 %v558_v9  ;;  %v538_v18 = vld [vmem:[#allocation10 + $0x48] sm:$0xff]  ;;  %v537_v20 = vld [vmem:[#allocation10 + $0x40] sm:$0xff]  ;;  %v552_v21 = vld [vmem:[#allocation10 + $0xb8] sm:$0xff]  ;;  %p2277_p1 = pneg %p2276_p7  ;;  %p2282_p0 = scmp.lt.s32.totalorder %s2280_s25, %s2274_s9 }
  0x79   : > { %1657 = vmatpush3.msra.mxu0 %v542_v10  ;;  %v536_v22 = vld [vmem:[#allocation10 + $0x38] sm:$0xff]  ;;  %v551_v23 = vld [vmem:[#allocation10 + $0xb0] sm:$0xff]  ;;  %v550_v25 = vld [vmem:[#allocation10 + $0xa8] sm:$0xff] }
  0x7a   : > { %1658 = vmatprep.subr.mxu0 %v557_v11  ;;  %v535_v24 = vld [vmem:[#allocation10 + $0x30] sm:$0xff]  ;;  %v534_v26 = vld [vmem:[#allocation10 + $0x28] sm:$0xff]  ;;  %v549_v27 = vld [vmem:[#allocation10 + $0xa0] sm:$0xff]  ;;  %p2283_p11 = por %p2282_p0, %p2281_p13 }
  0x7b   : > { %1659 = vmatpush3.msra.mxu0 %v541_v12  ;;  %v533_v28 = vld [vmem:[#allocation10 + $0x20] sm:$0xff]  ;;  %v548_v29 = vld [vmem:[#allocation10 + $0x98] sm:$0xff]  ;;  %v414_v32 = vld [vmem:[#allocation8 + $0x8] sm:$0xff] }
  0x7c   : > { %1660 = vmatprep.subr.mxu0 %v556_v13  ;;  %v532_v30 = vld [vmem:[#allocation10 + $0x18] sm:$0xff]  ;;  %v413_v33 = vld [vmem:[#allocation8] sm:$0xff]  ;;  %v418_v35 = vld [vmem:[#allocation8 + $0x10] sm:$0xff]  ;;  %p2284_p5 = pnand %p2283_p11, %p2277_p1 }
  0x7d   : > { %1661 = vmatpush3.msra.mxu0 %v540_v14  ;;  %v419_v34 = vld [vmem:[#allocation8 + $0x18] sm:$0xff]  ;;  %v591_v46 = vld [vmem:[#allocation10 + $0x1f0] sm:$0xff]  ;;  %v590_v48 = vld [vmem:[#allocation10 + $0x1e8] sm:$0xff] }
  0x7e   : > { %1662 = vmatprep.subr.mxu0 %v555_v15  ;;  %v425_v43 = vld [vmem:[#allocation7 + $0x8] sm:$0xff]  ;;  %v575_v47 = vld [vmem:[#allocation10 + $0x170] sm:$0xff]  ;;  %v574_v49 = vld [vmem:[#allocation10 + $0x168] sm:$0xff] }
  0x7f   : > { %1663 = vmatpush3.msra.mxu0 %v539_v16  ;;  %v592_v44 = vld [vmem:[#allocation10 + $0x1f8] sm:$0xff]  ;;  %v589_v50 = vld [vmem:[#allocation10 + $0x1e0] sm:$0xff]  ;;  %v587_v54 = vld [vmem:[#allocation10 + $0x1d0] sm:$0xff] }
  0x80   : > { %1664 = vmatprep.subr.mxu0 %v554_v17  ;;  %v576_v45 = vld [vmem:[#allocation10 + $0x178] sm:$0xff]  ;;  %v573_v51 = vld [vmem:[#allocation10 + $0x160] sm:$0xff]  ;;  %v571_v55 = vld [vmem:[#allocation10 + $0x150] sm:$0xff] }
  0x81   : > { %1665 = vmatpush3.msra.mxu0 %v538_v18  ;;  %v588_v52 = vld [vmem:[#allocation10 + $0x1d8] sm:$0xff]  ;;  %v586_v56 = vld [vmem:[#allocation10 + $0x1c8] sm:$0xff]  ;;  %v585_v58 = vld [vmem:[#allocation10 + $0x1c0] sm:$0xff] }
  0x82   : > { %1666 = vmatprep.subr.mxu0 %v553_v19  ;;  %v572_v53 = vld [vmem:[#allocation10 + $0x158] sm:$0xff]  ;;  %v570_v57 = vld [vmem:[#allocation10 + $0x148] sm:$0xff]  ;;  %v569_v59 = vld [vmem:[#allocation10 + $0x140] sm:$0xff]  ;;  %v509_v19 = vlaneseq }
  0x83   : > { %1667 = vmatpush3.msra.mxu0 %v537_v20  ;;  %v584_v60 = vld [vmem:[#allocation10 + $0x1b8] sm:$0xff]  ;;  %v583_v62 = vld [vmem:[#allocation10 + $0x1b0] sm:$0xff]  ;;  %v582_v0 = vld [vmem:[#allocation10 + $0x1a8] sm:$0xff] }
  0x84   : > { %1668 = vmatprep.subr.mxu0 %v552_v21  ;;  %v568_v61 = vld [vmem:[#allocation10 + $0x138] sm:$0xff]  ;;  %v567_v63 = vld [vmem:[#allocation10 + $0x130] sm:$0xff]  ;;  %v566_v1 = vld [vmem:[#allocation10 + $0x128] sm:$0xff]  ;;  %v2569_v20 = vshrl.u32 %v509_v19, 7 }
  0x85   : > { %1669 = vmatpush3.msra.mxu0 %v536_v22  ;;  %v581_v2 = vld [vmem:[#allocation10 + $0x1a0] sm:$0xff]  ;;  %v580_v4 = vld [vmem:[#allocation10 + $0x198] sm:$0xff]  ;;  %v547_v5 = vld [vmem:[#allocation10 + $0x90] sm:$0xff] }
  0x86   : > { %1670 = vmatprep.subr.mxu0 %v551_v23  ;;  %v565_v3 = vld [vmem:[#allocation10 + $0x120] sm:$0xff]  ;;  %v564_v6 = vld [vmem:[#allocation10 + $0x118] sm:$0xff]  ;;  %v531_v7 = vld [vmem:[#allocation10 + $0x10] sm:$0xff]  ;;  %vm511_vm1 = vcmp.lt.s32.totalorder %v2569_v20, 7  ;;  %vm521_vm2 = vcmp.lt.s32.totalorder %v2569_v20, 5  ;;  %vm516_vm3 = vcmp.lt.s32.totalorder %v2569_v20, 6 }
  0x87   : > { %1671 = vmatpush3.msra.mxu0 %v535_v24  ;;  %v579_v8 = vld [vmem:[#allocation10 + $0x190] sm:$0xff]  ;;  %v546_v9 = vld [vmem:[#allocation10 + $0x88] sm:$0xff]  ;;  %v545_v13 = vld [vmem:[#allocation10 + $0x80] sm:$0xff]  ;;  %vm526_vm4 = vcmp.lt.s32.totalorder %v2569_v20, 4 }
  0x88   : > { %1672 = vmatprep.subr.mxu0 %v550_v25  ;;  %v563_v10 = vld [vmem:[#allocation10 + $0x110] sm:$0xff]  ;;  %v530_v11 = vld [vmem:[#allocation10 + $0x8] sm:$0xff]  ;;  %v529_v15 = vld [vmem:[#allocation10] sm:$0xff] }
  0x89   : > { %1673 = vmatpush3.msra.mxu0 %v534_v26  ;;  %v578_v12 = vld [vmem:[#allocation10 + $0x188] sm:$0xff]  ;;  %v577_v16 = vld [vmem:[#allocation10 + $0x180] sm:$0xff]  ;;  %v608_v18 = vld [vmem:[#allocation10 + $0x278] sm:$0xff] }
  0x8a   : > { %1674 = vmatprep.subr.mxu0 %v549_v27  ;;  %v562_v14 = vld [vmem:[#allocation10 + $0x108] sm:$0xff]  ;;  %v561_v17 = vld [vmem:[#allocation10 + $0x100] sm:$0xff] }
  0x8b   : > { %1675 = vmatpush3.msra.mxu0 %v533_v28  ;;  %v914_v19 = vld [vmem:[#allocation10 + $0x440] sm:$0xff] }
  0x8c   : > { %1676 = vmatprep.subr.mxu0 %v548_v29 }
  0x8d   : > { %1677 = vmatpush3.msra.mxu0 %v532_v30 }
  0x8e   : > { %1678 = vmatprep.subr.mxu0 %v547_v5  ;;  %v902_v5 = vld [vmem:[#allocation10 + $0x3e0] sm:$0xff] }
  0x8f   : > { %1679 = vmatpush3.msra.mxu0 %v531_v7  ;;  %v917_v7 = vld [vmem:[#allocation10 + $0x458] sm:$0xff] }
  0x90   : > { %1680 = vmatprep.subr.mxu0 %v546_v9  ;;  %v901_v9 = vld [vmem:[#allocation10 + $0x3d8] sm:$0xff] }
  0x91   : > { %1681 = vmatpush3.msra.mxu0 %v530_v11  ;;  %v916_v11 = vld [vmem:[#allocation10 + $0x450] sm:$0xff] }
  0x92   : > { %1682 = vmatprep.subr.mxu0 %v545_v13  ;;  %v900_v13 = vld [vmem:[#allocation10 + $0x3d0] sm:$0xff] }
  0x93   : > { %1683 = vmatpush3.msra.mxu0 %v529_v15  ;;  %v915_v15 = vld [vmem:[#allocation10 + $0x448] sm:$0xff] }
  0x94   : > { %1948 = vmatprep.subr.mxu0 %v608_v18 }
 0x136   : > { %v1940_v31 = vpop.f32.mrf.mxu1 }
 0x137   : > { %v416_v37 = vmul.f32 %v1940_v31, %v414_v32  ;;  %v420_v40 = vmul.f32 %v1940_v31, %v418_v35  ;;  %v607_v32 = vld [vmem:[#allocation10 + $0x270] sm:$0xff]  ;;  %v606_v35 = vld [vmem:[#allocation10 + $0x268] sm:$0xff] }
 0x138   : > { %v404_v36 = vpop.f32.mrf.mxu1 }
 0x139   : > { %v415_v38 = vmul.f32 %v413_v33, %v404_v36  ;;  %v421_v39 = vmul.f32 %v419_v34, %v404_v36 }
 0x13b   : > { %v423_v41 = vadd.f32 %v421_v39, %v416_v37  ;;  %v422_v42 = vadd.f32 %v420_v40, %v415_v38  ;;  %v605_v37 = vld [vmem:[#allocation10 + $0x260] sm:$0xff] }
 0x13d   : > { %1941 = vmatprep.subr.mxu1 %v423_v41 }
 0x13e   : > { %1942 = vmatpush3.msra.mxu1 %v423_v41  ;;  %v604_v41 = vld [vmem:[#allocation10 + $0x258] sm:$0xff] }
 0x13f   : > { %1943 = vmatprep.subr.mxu1 %v422_v42 }
 0x140   : > { %1944 = vmatpush3.msra.mxu1 %v422_v42  ;;  %v603_v42 = vld [vmem:[#allocation10 + $0x250] sm:$0xff] }
 0x141   : > { %1946 = vmatmul.mubr.msk.f32.vlgmr.msra.gmra.mxu1 %vm331_vm0, %v425_v43  ;;  %1690 = vmatprep.subr.mxu1 %v592_v44  ;;  %v602_v43 = vld [vmem:[#allocation10 + $0x248] sm:$0xff]  ;;  %v601_v44 = vld [vmem:[#allocation10 + $0x240] sm:$0xff] }
 0x142   : > { %1691 = vmatpush3.msra.mxu1 %v576_v45  ;;  %v600_v45 = vld [vmem:[#allocation10 + $0x238] sm:$0xff] }
 0x143   : > { %1692 = vmatprep.subr.mxu1 %v591_v46  ;;  %v599_v46 = vld [vmem:[#allocation10 + $0x230] sm:$0xff] }
 0x144   : > { %1693 = vmatpush3.msra.mxu1 %v575_v47  ;;  %v598_v47 = vld [vmem:[#allocation10 + $0x228] sm:$0xff] }
 0x145   : > { %1694 = vmatprep.subr.mxu1 %v590_v48  ;;  %v597_v48 = vld [vmem:[#allocation10 + $0x220] sm:$0xff] }
 0x146   : > { %1695 = vmatpush3.msra.mxu1 %v574_v49  ;;  %v596_v49 = vld [vmem:[#allocation10 + $0x218] sm:$0xff] }
 0x147   : > { %1696 = vmatprep.subr.mxu1 %v589_v50  ;;  %v595_v50 = vld [vmem:[#allocation10 + $0x210] sm:$0xff] }
 0x148   : > { %1697 = vmatpush3.msra.mxu1 %v573_v51  ;;  %v594_v51 = vld [vmem:[#allocation10 + $0x208] sm:$0xff] }
 0x149   : > { %1698 = vmatprep.subr.mxu1 %v588_v52  ;;  %v593_v52 = vld [vmem:[#allocation10 + $0x200] sm:$0xff] }
 0x14a   : > { %1699 = vmatpush3.msra.mxu1 %v572_v53 }
 0x14b   : > { %1700 = vmatprep.subr.mxu1 %v587_v54  ;;  %v889_v54 = vld [vmem:[#allocation10 + $0x378] sm:$0xff] }
 0x14c   : > { %1701 = vmatpush3.msra.mxu1 %v571_v55  ;;  %v873_v55 = vld [vmem:[#allocation10 + $0x2f8] sm:$0xff] }
 0x14d   : > { %1702 = vmatprep.subr.mxu1 %v586_v56  ;;  %v921_v56 = vld [vmem:[#allocation10 + $0x478] sm:$0xff] }
 0x14e   : > { %1703 = vmatpush3.msra.mxu1 %v570_v57  ;;  %v888_v57 = vld [vmem:[#allocation10 + $0x370] sm:$0xff] }
 0x14f   : > { %1704 = vmatprep.subr.mxu1 %v585_v58  ;;  %v905_v58 = vld [vmem:[#allocation10 + $0x3f8] sm:$0xff] }
 0x150   : > { %1705 = vmatpush3.msra.mxu1 %v569_v59  ;;  %v872_v59 = vld [vmem:[#allocation10 + $0x2f0] sm:$0xff] }
 0x151   : > { %1706 = vmatprep.subr.mxu1 %v584_v60  ;;  %v920_v60 = vld [vmem:[#allocation10 + $0x470] sm:$0xff] }
 0x152   : > { %1707 = vmatpush3.msra.mxu1 %v568_v61  ;;  %v887_v61 = vld [vmem:[#allocation10 + $0x368] sm:$0xff] }
 0x153   : > { %1708 = vmatprep.subr.mxu1 %v583_v62  ;;  %v904_v62 = vld [vmem:[#allocation10 + $0x3f0] sm:$0xff] }
 0x154   : > { %1709 = vmatpush3.msra.mxu1 %v567_v63  ;;  %v871_v63 = vld [vmem:[#allocation10 + $0x2e8] sm:$0xff] }
 0x155   : > { %1710 = vmatprep.subr.mxu1 %v582_v0  ;;  %v919_v0 = vld [vmem:[#allocation10 + $0x468] sm:$0xff] }
 0x156   : > { %1711 = vmatpush3.msra.mxu1 %v566_v1  ;;  %v886_v1 = vld [vmem:[#allocation10 + $0x360] sm:$0xff] }
 0x157   : > { %1712 = vmatprep.subr.mxu1 %v581_v2  ;;  %v903_v2 = vld [vmem:[#allocation10 + $0x3e8] sm:$0xff] }
 0x158   : > { %1713 = vmatpush3.msra.mxu1 %v565_v3  ;;  %v918_v3 = vld [vmem:[#allocation10 + $0x460] sm:$0xff] }
 0x159   : > { %1714 = vmatprep.subr.mxu1 %v580_v4  ;;  %v870_v4 = vld [vmem:[#allocation10 + $0x2e0] sm:$0xff] }
 0x15a   : > { %1715 = vmatpush3.msra.mxu1 %v564_v6  ;;  %v885_v6 = vld [vmem:[#allocation10 + $0x358] sm:$0xff] }
 0x15b   : > { %1716 = vmatprep.subr.mxu1 %v579_v8  ;;  %v869_v8 = vld [vmem:[#allocation10 + $0x2d8] sm:$0xff] }
 0x15c   : > { %1717 = vmatpush3.msra.mxu1 %v563_v10  ;;  %v884_v10 = vld [vmem:[#allocation10 + $0x350] sm:$0xff] }
 0x15d   : > { %1718 = vmatprep.subr.mxu1 %v578_v12  ;;  %v868_v12 = vld [vmem:[#allocation10 + $0x2d0] sm:$0xff] }
 0x15e   : > { %1719 = vmatpush3.msra.mxu1 %v562_v14  ;;  %v883_v14 = vld [vmem:[#allocation10 + $0x348] sm:$0xff] }
 0x15f   : > { %1720 = vmatprep.subr.mxu1 %v577_v16  ;;  %v867_v16 = vld [vmem:[#allocation10 + $0x2c8] sm:$0xff] }
 0x160   : > { %1721 = vmatpush3.msra.mxu1 %v561_v17  ;;  %v899_v17 = vld [vmem:[#allocation10 + $0x3c8] sm:$0xff] }
 0x161   : > { %1746 = vmatprep.subr.mxu1 %v889_v54  ;;  %v906_v54 = vld [vmem:[#allocation10 + $0x400] sm:$0xff] }
 0x201   : > { %v1947_v21 = vpop.f32.mrf.mxu1 }
 0x202   : > { %v508_v23 = vrot.slane %v1947_v21, 1  ;;  %v520_v24 = vrot.slane %v1947_v21, 3  ;;  %v515_v28 = vrot.slane %v1947_v21, 2  ;;  %v2592_v38 = vrot.slane %v1947_v21, 4 }
 0x203   : > { %v2572_v22 = vpop.f32.mrf.mxu1 }
 0x204   : > { %v507_v25 = vrot.slane %v2572_v22, 1  ;;  %v519_v26 = vrot.slane %v2572_v22, 3  ;;  %v514_v27 = vrot.slane %v2572_v22, 2  ;;  %v524_v36 = vrot.slane %v2572_v22, 4 }
 0x206   : > { %v512_v29 = vsel %vm511_vm1, %v507_v25, %v508_v23  ;;  %v522_v30 = vsel %vm521_vm2, %v519_v26, %v520_v24  ;;  %v517_v31 = vsel %vm516_vm3, %v514_v27, %v515_v28  ;;  %v513_v33 = vsel %vm511_vm1, %v508_v23, %v507_v25  ;;  %v881_v23 = vld [vmem:[#allocation10 + $0x338] sm:$0xff] }
 0x207   : > { %678 = vmatprep.mubr.f32.mxu0 %v512_v29  ;;  %753 = vmatprep.mubr.f32.mxu1 %v522_v30  ;;  %v523_v34 = vsel %vm521_vm2, %v520_v24, %v519_v26  ;;  %v518_v39 = vsel %vm516_vm3, %v515_v28, %v514_v27  ;;  %v527_v40 = vsel %vm526_vm4, %v524_v36, %v2592_v38  ;;  %v913_v24 = vld [vmem:[#allocation10 + $0x438] sm:$0xff]  ;;  %v880_v27 = vld [vmem:[#allocation10 + $0x330] sm:$0xff] }
 0x208   : > { %679 = vmatmul.mubr.f32.vlgmr.msra.gmra.mxu0 %v2572_v22  ;;  %754 = vmatmul.mubr.f32.vlgmr.msra.gmra.mxu1 %v517_v31  ;;  %v528_v53 = vsel %vm526_vm4, %v2592_v38, %v524_v36  ;;  %v898_v22 = vld [vmem:[#allocation10 + $0x3c0] sm:$0xff]  ;;  %v865_v25 = vld [vmem:[#allocation10 + $0x2b8] sm:$0xff]  ;;  %v912_v28 = vld [vmem:[#allocation10 + $0x430] sm:$0xff] }
 0x209   : > { %1949 = vmatpush3.msra.mxu0 %v608_v18  ;;  %683 = vmatprep.mubr.f32.mxu0 %v513_v33  ;;  %v882_v18 = vld [vmem:[#allocation10 + $0x340] sm:$0xff]  ;;  %v897_v26 = vld [vmem:[#allocation10 + $0x3b8] sm:$0xff]  ;;  %v864_v29 = vld [vmem:[#allocation10 + $0x2b0] sm:$0xff] }
 0x20a   : > { %758 = vmatprep.mubr.f32.mxu1 %v523_v34  ;;  %1950 = vmatprep.subr.mxu0 %v607_v32  ;;  %v896_v30 = vld [vmem:[#allocation10 + $0x3b0] sm:$0xff]  ;;  %v879_v31 = vld [vmem:[#allocation10 + $0x328] sm:$0xff]  ;;  %v878_v34 = vld [vmem:[#allocation10 + $0x320] sm:$0xff] }
 0x20b   : > { %1951 = vmatpush3.msra.mxu0 %v607_v32  ;;  %1747 = vmatpush3.msra.mxu1 %v873_v55  ;;  %v911_v32 = vld [vmem:[#allocation10 + $0x428] sm:$0xff]  ;;  %v862_v36 = vld [vmem:[#allocation10 + $0x2a0] sm:$0xff] }
 0x20c   : > { %1952 = vmatprep.subr.mxu0 %v606_v35  ;;  %684 = vmatmul.mubr.f32.gmra.mxu0 %v1947_v21  ;;  %v866_v21 = vld [vmem:[#allocation10 + $0x2c0] sm:$0xff]  ;;  %v863_v33 = vld [vmem:[#allocation10 + $0x2a8] sm:$0xff] }
 0x20d   : > { %759 = vmatmul.mubr.f32.gmra.mxu1 %v518_v39  ;;  %1953 = vmatpush3.msra.mxu0 %v606_v35  ;;  %v895_v35 = vld [vmem:[#allocation10 + $0x3a8] sm:$0xff]  ;;  %v877_v39 = vld [vmem:[#allocation10 + $0x318] sm:$0xff]  ;;  %v890_v55 = vld [vmem:[#allocation10 + $0x380] sm:$0xff] }
 0x20e   : > { %1954 = vmatprep.subr.mxu0 %v605_v37  ;;  %1980 = vmatprep.mubr.f32.mxu0 %v527_v40  ;;  %v894_v40 = vld [vmem:[#allocation10 + $0x3a0] sm:$0xff] }
 0x20f   : > { %1955 = vmatpush3.msra.mxu0 %v605_v37  ;;  %1748 = vmatprep.subr.mxu1 %v888_v57  ;;  %v910_v37 = vld [vmem:[#allocation10 + $0x420] sm:$0xff] }
 0x210   : > { %1956 = vmatprep.subr.mxu0 %v604_v41  ;;  %1749 = vmatpush3.msra.mxu1 %v872_v59 }
 0x211   : > { %1957 = vmatpush3.msra.mxu0 %v604_v41  ;;  %1750 = vmatprep.subr.mxu1 %v887_v61  ;;  %v861_v41 = vld [vmem:[#allocation10 + $0x298] sm:$0xff] }
 0x212   : > { %1958 = vmatprep.subr.mxu0 %v603_v42  ;;  %1751 = vmatpush3.msra.mxu1 %v871_v63 }
 0x213   : > { %1959 = vmatpush3.msra.mxu0 %v603_v42  ;;  %1752 = vmatprep.subr.mxu1 %v886_v1  ;;  %v909_v42 = vld [vmem:[#allocation10 + $0x418] sm:$0xff] }
 0x214   : > { %1960 = vmatprep.subr.mxu0 %v602_v43  ;;  %1753 = vmatpush3.msra.mxu1 %v870_v4 }
 0x215   : > { %1961 = vmatpush3.msra.mxu0 %v602_v43  ;;  %1754 = vmatprep.subr.mxu1 %v885_v6  ;;  %v876_v43 = vld [vmem:[#allocation10 + $0x310] sm:$0xff] }
 0x216   : > { %1962 = vmatprep.subr.mxu0 %v601_v44  ;;  %1755 = vmatpush3.msra.mxu1 %v869_v8 }
 0x217   : > { %1963 = vmatpush3.msra.mxu0 %v601_v44  ;;  %1756 = vmatprep.subr.mxu1 %v884_v10  ;;  %v893_v44 = vld [vmem:[#allocation10 + $0x398] sm:$0xff] }
 0x218   : > { %1964 = vmatprep.subr.mxu0 %v600_v45  ;;  %1757 = vmatpush3.msra.mxu1 %v868_v12 }
 0x219   : > { %1965 = vmatpush3.msra.mxu0 %v600_v45  ;;  %1758 = vmatprep.subr.mxu1 %v883_v14  ;;  %v860_v45 = vld [vmem:[#allocation10 + $0x290] sm:$0xff] }
 0x21a   : > { %1966 = vmatprep.subr.mxu0 %v599_v46  ;;  %1759 = vmatpush3.msra.mxu1 %v867_v16 }
 0x21b   : > { %1967 = vmatpush3.msra.mxu0 %v599_v46  ;;  %1760 = vmatprep.subr.mxu1 %v882_v18  ;;  %v908_v46 = vld [vmem:[#allocation10 + $0x410] sm:$0xff] }
 0x21c   : > { %1968 = vmatprep.subr.mxu0 %v598_v47  ;;  %1761 = vmatpush3.msra.mxu1 %v866_v21 }
 0x21d   : > { %1969 = vmatpush3.msra.mxu0 %v598_v47  ;;  %1762 = vmatprep.subr.mxu1 %v881_v23  ;;  %v875_v47 = vld [vmem:[#allocation10 + $0x308] sm:$0xff] }
 0x21e   : > { %1970 = vmatprep.subr.mxu0 %v597_v48  ;;  %1763 = vmatpush3.msra.mxu1 %v865_v25 }
 0x21f   : > { %1971 = vmatpush3.msra.mxu0 %v597_v48  ;;  %1764 = vmatprep.subr.mxu1 %v880_v27  ;;  %v892_v48 = vld [vmem:[#allocation10 + $0x390] sm:$0xff] }
 0x220   : > { %1972 = vmatprep.subr.mxu0 %v596_v49  ;;  %1765 = vmatpush3.msra.mxu1 %v864_v29  ;;  %v935_v29 = vld [vmem:[#allocation10 + $0x4e8] sm:$0xff] }
 0x221   : > { %1973 = vmatpush3.msra.mxu0 %v596_v49  ;;  %1766 = vmatprep.subr.mxu1 %v879_v31  ;;  %v859_v49 = vld [vmem:[#allocation10 + $0x288] sm:$0xff]  ;;  %v934_v31 = vld [vmem:[#allocation10 + $0x4e0] sm:$0xff] }
 0x222   : > { %1974 = vmatprep.subr.mxu0 %v595_v50  ;;  %1767 = vmatpush3.msra.mxu1 %v863_v33 }
 0x223   : > { %1975 = vmatpush3.msra.mxu0 %v595_v50  ;;  %1768 = vmatprep.subr.mxu1 %v878_v34  ;;  %v907_v50 = vld [vmem:[#allocation10 + $0x408] sm:$0xff] }
 0x224   : > { %1976 = vmatprep.subr.mxu0 %v594_v51  ;;  %1769 = vmatpush3.msra.mxu1 %v862_v36  ;;  %v932_v36 = vld [vmem:[#allocation10 + $0x4d0] sm:$0xff] }
 0x225   : > { %1977 = vmatpush3.msra.mxu0 %v594_v51  ;;  %1770 = vmatprep.subr.mxu1 %v877_v39  ;;  %v874_v51 = vld [vmem:[#allocation10 + $0x300] sm:$0xff] }
 0x226   : > { %1978 = vmatprep.subr.mxu0 %v593_v52  ;;  %1771 = vmatpush3.msra.mxu1 %v861_v41  ;;  %v930_v39 = vld [vmem:[#allocation10 + $0x4c0] sm:$0xff]  ;;  %v928_v41 = vld [vmem:[#allocation10 + $0x4b0] sm:$0xff] }
 0x227   : > { %1979 = vmatpush3.msra.mxu0 %v593_v52  ;;  %1772 = vmatprep.subr.mxu1 %v876_v43  ;;  %v891_v52 = vld [vmem:[#allocation10 + $0x388] sm:$0xff]  ;;  %v926_v43 = vld [vmem:[#allocation10 + $0x4a0] sm:$0xff] }
 0x228   : > { %1981 = vmatmul.mubr.f32.vlgmr.msra.gmra.mxu0 %v528_v53  ;;  %1784 = vmatprep.subr.mxu0 %v921_v56  ;;  %v858_v53 = vld [vmem:[#allocation10 + $0x280] sm:$0xff]  ;;  %v937_v56 = vld [vmem:[#allocation10 + $0x4f8] sm:$0xff] }
 0x229   : > { %1785 = vmatpush3.msra.mxu0 %v905_v58  ;;  %1773 = vmatpush3.msra.mxu1 %v860_v45  ;;  %v924_v45 = vld [vmem:[#allocation10 + $0x490] sm:$0xff] }
 0x22a   : > { %1786 = vmatprep.subr.mxu0 %v920_v60  ;;  %1774 = vmatprep.subr.mxu1 %v875_v47  ;;  %v922_v47 = vld [vmem:[#allocation10 + $0x480] sm:$0xff] }
 0x22b   : > { %1787 = vmatpush3.msra.mxu0 %v904_v62  ;;  %1775 = vmatpush3.msra.mxu1 %v859_v49  ;;  %v1218_v49 = vld [vmem:[#allocation10 + $0x5f8] sm:$0xff] }
 0x22c   : > { %1788 = vmatprep.subr.mxu0 %v919_v0  ;;  %1776 = vmatprep.subr.mxu1 %v874_v51  ;;  %v1250_v51 = vld [vmem:[#allocation10 + $0x6f8] sm:$0xff] }
 0x22d   : > { %1789 = vmatpush3.msra.mxu0 %v903_v2  ;;  %1777 = vmatpush3.msra.mxu1 %v858_v53  ;;  %v1637_v2 = vld [vmem:[%s2713_s5] ss:$0 sm:$0xff]  ;;  %v1234_v53 = vld [vmem:[#allocation10 + $0x678] sm:$0xff] }
 0x22e   : > { %1790 = vmatprep.subr.mxu0 %v918_v3  ;;  %1983 = vmatprep.subr.mxu1 %v937_v56 }
 0x22f   : > { %1791 = vmatpush3.msra.mxu0 %v902_v5 }
 0x230   : > { %1792 = vmatprep.subr.mxu0 %v917_v7 }
 0x231   : > { %1793 = vmatpush3.msra.mxu0 %v901_v9 }
 0x232   : > { %1794 = vmatprep.subr.mxu0 %v916_v11 }
 0x233   : > { %1795 = vmatpush3.msra.mxu0 %v900_v13 }
 0x234   : > { %1796 = vmatprep.subr.mxu0 %v915_v15 }
 0x235   : > { %1797 = vmatpush3.msra.mxu0 %v899_v17 }
 0x236   : > { %1798 = vmatprep.subr.mxu0 %v914_v19 }
 0x237   : > { %1799 = vmatpush3.msra.mxu0 %v898_v22 }
 0x238   : > { %1800 = vmatprep.subr.mxu0 %v913_v24 }
 0x239   : > { %1801 = vmatpush3.msra.mxu0 %v897_v26  ;;  %v936_v26 = vld [vmem:[#allocation10 + $0x4f0] sm:$0xff] }
 0x23a   : > { %1802 = vmatprep.subr.mxu0 %v912_v28 }
 0x23b   : > { %1803 = vmatpush3.msra.mxu0 %v896_v30 }
 0x23c   : > { %1804 = vmatprep.subr.mxu0 %v911_v32 }
 0x23d   : > { %1805 = vmatpush3.msra.mxu0 %v895_v35  ;;  %v933_v35 = vld [vmem:[#allocation10 + $0x4d8] sm:$0xff] }
 0x23e   : > { %1806 = vmatprep.subr.mxu0 %v910_v37  ;;  %v931_v37 = vld [vmem:[#allocation10 + $0x4c8] sm:$0xff] }
 0x23f   : > { %1807 = vmatpush3.msra.mxu0 %v894_v40  ;;  %v929_v40 = vld [vmem:[#allocation10 + $0x4b8] sm:$0xff] }
 0x240   : > { %1808 = vmatprep.subr.mxu0 %v909_v42  ;;  %v927_v42 = vld [vmem:[#allocation10 + $0x4a8] sm:$0xff] }
 0x241   : > { %1809 = vmatpush3.msra.mxu0 %v893_v44  ;;  %v925_v44 = vld [vmem:[#allocation10 + $0x498] sm:$0xff] }
 0x242   : > { %1810 = vmatprep.subr.mxu0 %v908_v46  ;;  %v923_v46 = vld [vmem:[#allocation10 + $0x488] sm:$0xff] }
 0x243   : > { %1811 = vmatpush3.msra.mxu0 %v892_v48 }
 0x244   : > { %1812 = vmatprep.subr.mxu0 %v907_v50  ;;  %v1202_v50 = vld [vmem:[#allocation10 + $0x578] sm:$0xff] }
 0x245   : > { %1813 = vmatpush3.msra.mxu0 %v891_v52  ;;  %v1217_v52 = vld [vmem:[#allocation10 + $0x5f0] sm:$0xff] }
 0x246   : > { %1814 = vmatprep.subr.mxu0 %v906_v54  ;;  %v1201_v54 = vld [vmem:[#allocation10 + $0x570] sm:$0xff] }
 0x247   : > { %1815 = vmatpush3.msra.mxu0 %v890_v55  ;;  %v1249_v55 = vld [vmem:[#allocation10 + $0x6f0] sm:$0xff] }
 0x248   : > { %1840 = vmatprep.subr.mxu0 %v1218_v49  ;;  %v1235_v49 = vld [vmem:[#allocation10 + $0x680] sm:$0xff] }
 0x2c8   : > { %v1684_v57 = vpop.f32.mrf.mxu0  ;;  %v1722_v59 = vpop.f32.mrf.mxu1 }
 0x2ca   : > { %v1685_v58 = vpop.f32.mrf.mxu0  ;;  %v1723_v61 = vpop.f32.mrf.mxu1 }
 0x2cb   : > { %v1686_v1 = vadd.f32 %v1685_v58, %v1684_v57  ;;  %v1724_v7 = vadd.f32 %v1723_v61, %v1722_v59  ;;  %v1233_v57 = vld [vmem:[#allocation10 + $0x670] sm:$0xff]  ;;  %v1200_v58 = vld [vmem:[#allocation10 + $0x568] sm:$0xff] }
 0x2cc   : > { %v1687_v60 = vpop.f32.mrf.mxu0  ;;  %v1248_v59 = vld [vmem:[#allocation10 + $0x6e8] sm:$0xff] }
 0x2cd   : > { %v1725_v63 = vpop.f32.mrf.mxu1  ;;  %v681_v5 = vadd.f32 %v1686_v1, %v1637_v2  ;;  %v1232_v61 = vld [vmem:[#allocation10 + $0x668] sm:$0xff]  ;;  %v1214_v1 = vld [vmem:[#allocation10 + $0x5d8] sm:$0xff] }
 0x2ce   : > { %v1688_v62 = vpop.f32.mrf.mxu0 }
 0x2cf   : > { %v1689_v0 = vadd.f32 %v1688_v62, %v1687_v60  ;;  %v1726_v3 = vpop.f32.mrf.mxu1  ;;  %v756_v11 = vadd.f32 %v1724_v7, %v681_v5  ;;  %v1215_v60 = vld [vmem:[#allocation10 + $0x5e0] sm:$0xff]  ;;  %v1213_v5 = vld [vmem:[#allocation10 + $0x5d0] sm:$0xff] }
 0x2d0   : > { %v1727_v6 = vadd.f32 %v1726_v3, %v1725_v63  ;;  %v1247_v62 = vld [vmem:[#allocation10 + $0x6e0] sm:$0xff]  ;;  %v1198_v3 = vld [vmem:[#allocation10 + $0x558] sm:$0xff]  ;;  %v1197_v7 = vld [vmem:[#allocation10 + $0x550] sm:$0xff] }
 0x2d1   : > { %v686_v4 = vadd.f32 %v1689_v0, %v1637_v2  ;;  %v1199_v63 = vld [vmem:[#allocation10 + $0x560] sm:$0xff]  ;;  %v1246_v2 = vld [vmem:[#allocation10 + $0x6d8] sm:$0xff] }
 0x2d2   : > { %v1231_v0 = vld [vmem:[#allocation10 + $0x660] sm:$0xff] }
 0x2d3   : > { %v761_v8 = vadd.f32 %v1727_v6, %v686_v4  ;;  %v1230_v4 = vld [vmem:[#allocation10 + $0x658] sm:$0xff]  ;;  %v1245_v6 = vld [vmem:[#allocation10 + $0x6d0] sm:$0xff] }
 0x2e8   : > { %v1982_v9 = vpop.f32.mrf.mxu0 }
 0x2e9   : > { %v836_v10 = vadd.f32 %v1982_v9, %v761_v8  ;;  %v1229_v8 = vld [vmem:[#allocation10 + $0x650] sm:$0xff]  ;;  %v1212_v9 = vld [vmem:[#allocation10 + $0x5c8] sm:$0xff] }
 0x2ea   : > { %v830_v12 = vpop.f32.mrf.mxu0 }
 0x2eb   : > { %v2605_v13 = vmax.f32 %v836_v10, 0.0  ;;  %v831_v14 = vadd.f32 %v830_v12, %v756_v11  ;;  %v1244_v10 = vld [vmem:[#allocation10 + $0x6c8] sm:$0xff] }
 0x2ec   : > { %v1196_v11 = vld [vmem:[#allocation10 + $0x548] sm:$0xff] }
 0x2ed   : > { %v2607_v15 = vmax.f32 %v831_v14, 0.0  ;;  %v842_v16 = vrot.slane %v2605_v13, 1  ;;  %v850_v17 = vrot.slane %v2605_v13, 3  ;;  %v846_v22 = vrot.slane %v2605_v13, 2  ;;  %v1228_v12 = vld [vmem:[#allocation10 + $0x648] sm:$0xff]  ;;  %v1243_v14 = vld [vmem:[#allocation10 + $0x6c0] sm:$0xff] }
 0x2ee   : > { %v854_v32 = vrot.slane %v2605_v13, 4 }
 0x2ef   : > { %v841_v18 = vrot.slane %v2607_v15, 1  ;;  %v849_v19 = vrot.slane %v2607_v15, 3  ;;  %v845_v21 = vrot.slane %v2607_v15, 2  ;;  %v853_v30 = vrot.slane %v2607_v15, 4 }
 0x2f1   : > { %v843_v23 = vsel %vm511_vm1, %v841_v18, %v842_v16  ;;  %v851_v24 = vsel %vm521_vm2, %v849_v19, %v850_v17  ;;  %v847_v25 = vsel %vm516_vm3, %v845_v21, %v846_v22  ;;  %v844_v27 = vsel %vm511_vm1, %v842_v16, %v841_v18  ;;  %v1227_v16 = vld [vmem:[#allocation10 + $0x640] sm:$0xff]  ;;  %v1242_v18 = vld [vmem:[#allocation10 + $0x6b8] sm:$0xff] }
 0x2f2   : > { %1007 = vmatprep.mubr.f32.mxu1 %v843_v23  ;;  %1082 = vmatprep.mubr.f32.mxu0 %v851_v24  ;;  %v852_v28 = vsel %vm521_vm2, %v850_v17, %v849_v19  ;;  %v848_v33 = vsel %vm516_vm3, %v846_v22, %v845_v21  ;;  %v855_v34 = vsel %vm526_vm4, %v853_v30, %v854_v32  ;;  %v1210_v17 = vld [vmem:[#allocation10 + $0x5b8] sm:$0xff]  ;;  %v1209_v22 = vld [vmem:[#allocation10 + $0x5b0] sm:$0xff] }
 0x2f3   : > { %1008 = vmatmul.mubr.f32.vlgmr.msra.gmra.mxu1 %v2607_v15  ;;  %1083 = vmatmul.mubr.f32.vlgmr.msra.gmra.mxu0 %v847_v25  ;;  %v856_v48 = vsel %vm526_vm4, %v854_v32, %v853_v30  ;;  %v1195_v15 = vld [vmem:[#allocation10 + $0x540] sm:$0xff]  ;;  %v1194_v19 = vld [vmem:[#allocation10 + $0x538] sm:$0xff]  ;;  %v1241_v23 = vld [vmem:[#allocation10 + $0x6b0] sm:$0xff] }
 0x2f4   : > { %1984 = vmatpush3.msra.mxu1 %v937_v56  ;;  %1012 = vmatprep.mubr.f32.mxu1 %v844_v27  ;;  %v1216_v56 = vld [vmem:[#allocation10 + $0x5e8] sm:$0xff]  ;;  %v1226_v21 = vld [vmem:[#allocation10 + $0x638] sm:$0xff]  ;;  %v1193_v24 = vld [vmem:[#allocation10 + $0x530] sm:$0xff] }
 0x2f5   : > { %1087 = vmatprep.mubr.f32.mxu0 %v852_v28  ;;  %1985 = vmatprep.subr.mxu1 %v936_v26  ;;  %v1225_v25 = vld [vmem:[#allocation10 + $0x630] sm:$0xff]  ;;  %v1240_v27 = vld [vmem:[#allocation10 + $0x6a8] sm:$0xff]  ;;  %v1239_v32 = vld [vmem:[#allocation10 + $0x6a0] sm:$0xff] }
 0x2f6   : > { %1986 = vmatpush3.msra.mxu1 %v936_v26  ;;  %1841 = vmatpush3.msra.mxu0 %v1202_v50  ;;  %v1208_v26 = vld [vmem:[#allocation10 + $0x5a8] sm:$0xff]  ;;  %v1219_v50 = vld [vmem:[#allocation10 + $0x600] sm:$0xff] }
 0x2f7   : > { %1987 = vmatprep.subr.mxu1 %v935_v29  ;;  %1013 = vmatmul.mubr.f32.gmra.mxu1 %v2605_v13  ;;  %v1211_v13 = vld [vmem:[#allocation10 + $0x5c0] sm:$0xff]  ;;  %v1192_v28 = vld [vmem:[#allocation10 + $0x528] sm:$0xff] }
 0x2f8   : > { %1088 = vmatmul.mubr.f32.gmra.mxu0 %v848_v33  ;;  %1988 = vmatpush3.msra.mxu1 %v935_v29  ;;  %v1207_v29 = vld [vmem:[#allocation10 + $0x5a0] sm:$0xff]  ;;  %v1224_v30 = vld [vmem:[#allocation10 + $0x628] sm:$0xff]  ;;  %v1206_v33 = vld [vmem:[#allocation10 + $0x598] sm:$0xff] }
 0x2f9   : > { %1989 = vmatprep.subr.mxu1 %v934_v31  ;;  %2015 = vmatprep.mubr.f32.mxu1 %v855_v34  ;;  %v1223_v34 = vld [vmem:[#allocation10 + $0x620] sm:$0xff] }
 0x2fa   : > { %1990 = vmatpush3.msra.mxu1 %v934_v31  ;;  %1842 = vmatprep.subr.mxu0 %v1217_v52  ;;  %v1191_v31 = vld [vmem:[#allocation10 + $0x520] sm:$0xff] }
 0x2fb   : > { %1991 = vmatprep.subr.mxu1 %v933_v35  ;;  %1843 = vmatpush3.msra.mxu0 %v1201_v54 }
 0x2fc   : > { %1992 = vmatpush3.msra.mxu1 %v933_v35  ;;  %1844 = vmatprep.subr.mxu0 %v1216_v56  ;;  %v1190_v35 = vld [vmem:[#allocation10 + $0x518] sm:$0xff] }
 0x2fd   : > { %1993 = vmatprep.subr.mxu1 %v932_v36  ;;  %1845 = vmatpush3.msra.mxu0 %v1200_v58 }
 0x2fe   : > { %1994 = vmatpush3.msra.mxu1 %v932_v36  ;;  %1846 = vmatprep.subr.mxu0 %v1215_v60  ;;  %v1238_v36 = vld [vmem:[#allocation10 + $0x698] sm:$0xff] }
 0x2ff   : > { %1995 = vmatprep.subr.mxu1 %v931_v37  ;;  %1847 = vmatpush3.msra.mxu0 %v1199_v63 }
 0x300   : > { %1996 = vmatpush3.msra.mxu1 %v931_v37  ;;  %1848 = vmatprep.subr.mxu0 %v1214_v1  ;;  %v1205_v37 = vld [vmem:[#allocation10 + $0x590] sm:$0xff] }
 0x301   : > { %1997 = vmatprep.subr.mxu1 %v930_v39  ;;  %1849 = vmatpush3.msra.mxu0 %v1198_v3 }
 0x302   : > { %1998 = vmatpush3.msra.mxu1 %v930_v39  ;;  %1850 = vmatprep.subr.mxu0 %v1213_v5  ;;  %v1222_v39 = vld [vmem:[#allocation10 + $0x618] sm:$0xff] }
 0x303   : > { %1999 = vmatprep.subr.mxu1 %v929_v40  ;;  %1851 = vmatpush3.msra.mxu0 %v1197_v7 }
 0x304   : > { %2000 = vmatpush3.msra.mxu1 %v929_v40  ;;  %1852 = vmatprep.subr.mxu0 %v1212_v9  ;;  %v1189_v40 = vld [vmem:[#allocation10 + $0x510] sm:$0xff] }
 0x305   : > { %2001 = vmatprep.subr.mxu1 %v928_v41  ;;  %1853 = vmatpush3.msra.mxu0 %v1196_v11 }
 0x306   : > { %2002 = vmatpush3.msra.mxu1 %v928_v41  ;;  %1854 = vmatprep.subr.mxu0 %v1211_v13  ;;  %v1237_v41 = vld [vmem:[#allocation10 + $0x690] sm:$0xff] }
 0x307   : > { %2003 = vmatprep.subr.mxu1 %v927_v42  ;;  %1855 = vmatpush3.msra.mxu0 %v1195_v15 }
 0x308   : > { %2004 = vmatpush3.msra.mxu1 %v927_v42  ;;  %1856 = vmatprep.subr.mxu0 %v1210_v17  ;;  %v1204_v42 = vld [vmem:[#allocation10 + $0x588] sm:$0xff] }
 0x309   : > { %2005 = vmatprep.subr.mxu1 %v926_v43  ;;  %1857 = vmatpush3.msra.mxu0 %v1194_v19 }
 0x30a   : > { %2006 = vmatpush3.msra.mxu1 %v926_v43  ;;  %1858 = vmatprep.subr.mxu0 %v1209_v22  ;;  %v1221_v43 = vld [vmem:[#allocation10 + $0x610] sm:$0xff] }
 0x30b   : > { %2007 = vmatprep.subr.mxu1 %v925_v44  ;;  %1859 = vmatpush3.msra.mxu0 %v1193_v24  ;;  %v1264_v24 = vld [vmem:[#allocation10 + $0x768] sm:$0xff] }
 0x30c   : > { %2008 = vmatpush3.msra.mxu1 %v925_v44  ;;  %1860 = vmatprep.subr.mxu0 %v1208_v26  ;;  %v1188_v44 = vld [vmem:[#allocation10 + $0x508] sm:$0xff]  ;;  %v1263_v26 = vld [vmem:[#allocation10 + $0x760] sm:$0xff] }
 0x30d   : > { %2009 = vmatprep.subr.mxu1 %v924_v45  ;;  %1861 = vmatpush3.msra.mxu0 %v1192_v28 }
 0x30e   : > { %2010 = vmatpush3.msra.mxu1 %v924_v45  ;;  %1862 = vmatprep.subr.mxu0 %v1207_v29  ;;  %v1236_v45 = vld [vmem:[#allocation10 + $0x688] sm:$0xff] }
 0x30f   : > { %2011 = vmatprep.subr.mxu1 %v923_v46  ;;  %1863 = vmatpush3.msra.mxu0 %v1191_v31  ;;  %v1261_v31 = vld [vmem:[#allocation10 + $0x750] sm:$0xff] }
 0x310   : > { %2012 = vmatpush3.msra.mxu1 %v923_v46  ;;  %1864 = vmatprep.subr.mxu0 %v1206_v33  ;;  %v1203_v46 = vld [vmem:[#allocation10 + $0x580] sm:$0xff] }
 0x311   : > { %2013 = vmatprep.subr.mxu1 %v922_v47  ;;  %1865 = vmatpush3.msra.mxu0 %v1190_v35  ;;  %v1259_v33 = vld [vmem:[#allocation10 + $0x740] sm:$0xff]  ;;  %v1257_v35 = vld [vmem:[#allocation10 + $0x730] sm:$0xff] }
 0x312   : > { %2014 = vmatpush3.msra.mxu1 %v922_v47  ;;  %1866 = vmatprep.subr.mxu0 %v1205_v37  ;;  %v1220_v47 = vld [vmem:[#allocation10 + $0x608] sm:$0xff]  ;;  %v1255_v37 = vld [vmem:[#allocation10 + $0x720] sm:$0xff] }
 0x313   : > { %2016 = vmatmul.mubr.f32.vlgmr.msra.gmra.mxu1 %v856_v48  ;;  %1878 = vmatprep.subr.mxu1 %v1250_v51  ;;  %v1187_v48 = vld [vmem:[#allocation10 + $0x500] sm:$0xff]  ;;  %v1266_v51 = vld [vmem:[#allocation10 + $0x778] sm:$0xff] }
 0x314   : > { %1879 = vmatpush3.msra.mxu1 %v1234_v53  ;;  %1867 = vmatpush3.msra.mxu0 %v1189_v40  ;;  %v1253_v40 = vld [vmem:[#allocation10 + $0x710] sm:$0xff] }
 0x315   : > { %1880 = vmatprep.subr.mxu1 %v1249_v55  ;;  %1868 = vmatprep.subr.mxu0 %v1204_v42  ;;  %v1251_v42 = vld [vmem:[#allocation10 + $0x700] sm:$0xff] }
 0x316   : > { %1881 = vmatpush3.msra.mxu1 %v1233_v57  ;;  %1869 = vmatpush3.msra.mxu0 %v1188_v44 }
 0x317   : > { %1882 = vmatprep.subr.mxu1 %v1248_v59  ;;  %1870 = vmatprep.subr.mxu0 %v1203_v46 }
 0x318   : > { %1883 = vmatpush3.msra.mxu1 %v1232_v61  ;;  %1871 = vmatpush3.msra.mxu0 %v1187_v48  ;;  %v1638_v61 = vld [vmem:[%s2713_s5 + $0x1] ss:$0 sm:$0xff] }
 0x319   : > { %1884 = vmatprep.subr.mxu1 %v1247_v62  ;;  %2018 = vmatprep.subr.mxu0 %v1266_v51 }
 0x31a   : > { %1885 = vmatpush3.msra.mxu1 %v1231_v0 }
 0x31b   : > { %1886 = vmatprep.subr.mxu1 %v1246_v2 }
 0x31c   : > { %1887 = vmatpush3.msra.mxu1 %v1230_v4 }
 0x31d   : > { %1888 = vmatprep.subr.mxu1 %v1245_v6 }
 0x31e   : > { %1889 = vmatpush3.msra.mxu1 %v1229_v8 }
 0x31f   : > { %1890 = vmatprep.subr.mxu1 %v1244_v10 }
 0x320   : > { %1891 = vmatpush3.msra.mxu1 %v1228_v12 }
 0x321   : > { %1892 = vmatprep.subr.mxu1 %v1243_v14 }
 0x322   : > { %1893 = vmatpush3.msra.mxu1 %v1227_v16 }
 0x323   : > { %1894 = vmatprep.subr.mxu1 %v1242_v18 }
 0x324   : > { %1895 = vmatpush3.msra.mxu1 %v1226_v21  ;;  %v1265_v21 = vld [vmem:[#allocation10 + $0x770] sm:$0xff] }
 0x325   : > { %1896 = vmatprep.subr.mxu1 %v1241_v23 }
 0x326   : > { %1897 = vmatpush3.msra.mxu1 %v1225_v25 }
 0x327   : > { %1898 = vmatprep.subr.mxu1 %v1240_v27 }
 0x328   : > { %1899 = vmatpush3.msra.mxu1 %v1224_v30  ;;  %v1262_v30 = vld [vmem:[#allocation10 + $0x758] sm:$0xff] }
 0x329   : > { %1900 = vmatprep.subr.mxu1 %v1239_v32  ;;  %v1260_v32 = vld [vmem:[#allocation10 + $0x748] sm:$0xff] }
 0x32a   : > { %1901 = vmatpush3.msra.mxu1 %v1223_v34  ;;  %v1258_v34 = vld [vmem:[#allocation10 + $0x738] sm:$0xff] }
 0x32b   : > { %1902 = vmatprep.subr.mxu1 %v1238_v36  ;;  %v1256_v36 = vld [vmem:[#allocation10 + $0x728] sm:$0xff] }
 0x32c   : > { %1903 = vmatpush3.msra.mxu1 %v1222_v39  ;;  %v1254_v39 = vld [vmem:[#allocation10 + $0x718] sm:$0xff] }
 0x32d   : > { %1904 = vmatprep.subr.mxu1 %v1237_v41  ;;  %v1252_v41 = vld [vmem:[#allocation10 + $0x708] sm:$0xff] }
 0x32e   : > { %1905 = vmatpush3.msra.mxu1 %v1221_v43 }
 0x32f   : > { %1906 = vmatprep.subr.mxu1 %v1236_v45 }
 0x330   : > { %1907 = vmatpush3.msra.mxu1 %v1220_v47 }
 0x331   : > { %1908 = vmatprep.subr.mxu1 %v1235_v49 }
 0x332   : > { %1909 = vmatpush3.msra.mxu1 %v1219_v50 }
 0x3b3   : > { %v1778_v52 = vpop.f32.mrf.mxu1  ;;  %v1816_v54 = vpop.f32.mrf.mxu0 }
 0x3b5   : > { %v1779_v53 = vpop.f32.mrf.mxu1  ;;  %v1817_v56 = vpop.f32.mrf.mxu0 }
 0x3b6   : > { %v1780_v60 = vadd.f32 %v1779_v53, %v1778_v52  ;;  %v1818_v2 = vadd.f32 %v1817_v56, %v1816_v54  ;;  %v1639_v53 = vld [vmem:[%s2713_s5 + $0x2] ss:$0 sm:$0xff] }
 0x3b7   : > { %v1781_v55 = vpop.f32.mrf.mxu1 }
 0x3b8   : > { %v1819_v58 = vpop.f32.mrf.mxu0  ;;  %v1010_v0 = vadd.f32 %v1780_v60, %v1638_v61 }
 0x3b9   : > { %v1782_v57 = vpop.f32.mrf.mxu1 }
 0x3ba   : > { %v1783_v59 = vadd.f32 %v1782_v57, %v1781_v55  ;;  %v1820_v62 = vpop.f32.mrf.mxu0  ;;  %v1085_v6 = vadd.f32 %v1818_v2, %v1010_v0 }
 0x3bb   : > { %v1821_v1 = vadd.f32 %v1820_v62, %v1819_v58 }
 0x3bc   : > { %v1015_v63 = vadd.f32 %v1783_v59, %v1638_v61 }
 0x3be   : > { %v1090_v3 = vadd.f32 %v1821_v1, %v1015_v63 }
 0x3d3   : > { %v2017_v4 = vpop.f32.mrf.mxu1 }
 0x3d4   : > { %v1165_v5 = vadd.f32 %v2017_v4, %v1090_v3 }
 0x3d5   : > { %v1159_v7 = vpop.f32.mrf.mxu1 }
 0x3d6   : > { %v2638_v8 = vmax.f32 %v1165_v5, 0.0  ;;  %v1160_v9 = vadd.f32 %v1159_v7, %v1085_v6 }
 0x3d8   : > { %v2640_v10 = vmax.f32 %v1160_v9, 0.0  ;;  %v1171_v11 = vrot.slane %v2638_v8, 1  ;;  %v1179_v12 = vrot.slane %v2638_v8, 3  ;;  %v1175_v16 = vrot.slane %v2638_v8, 2 }
 0x3d9   : > { %v1183_v27 = vrot.slane %v2638_v8, 4 }
 0x3da   : > { %v1170_v13 = vrot.slane %v2640_v10, 1  ;;  %v1178_v14 = vrot.slane %v2640_v10, 3  ;;  %v1174_v15 = vrot.slane %v2640_v10, 2  ;;  %v1182_v25 = vrot.slane %v2640_v10, 4 }
 0x3dc   : > { %v1172_v17 = vsel %vm511_vm1, %v1170_v13, %v1171_v11  ;;  %v1180_v18 = vsel %vm521_vm2, %v1178_v14, %v1179_v12  ;;  %v1176_v19 = vsel %vm516_vm3, %v1174_v15, %v1175_v16  ;;  %v1173_v22 = vsel %vm511_vm1, %v1171_v11, %v1170_v13 }
 0x3dd   : > { %1336 = vmatprep.mubr.f32.mxu0 %v1172_v17  ;;  %1410 = vmatprep.mubr.f32.mxu1 %v1180_v18  ;;  %v1181_v23 = vsel %vm521_vm2, %v1179_v12, %v1178_v14  ;;  %v1177_v28 = vsel %vm516_vm3, %v1175_v16, %v1174_v15  ;;  %v1184_v29 = vsel %vm526_vm4, %v1182_v25, %v1183_v27 }
 0x3de   : > { %1337 = vmatmul.mubr.f32.vlgmr.msra.gmra.mxu0 %v2640_v10  ;;  %1411 = vmatmul.mubr.f32.vlgmr.msra.gmra.mxu1 %v1176_v19  ;;  %v1185_v43 = vsel %vm526_vm4, %v1183_v27, %v1182_v25 }
 0x3df   : > { %2019 = vmatpush3.msra.mxu0 %v1266_v51  ;;  %1341 = vmatprep.mubr.f32.mxu0 %v1173_v22 }
 0x3e0   : > { %1415 = vmatprep.mubr.f32.mxu1 %v1181_v23  ;;  %2020 = vmatprep.subr.mxu0 %v1265_v21 }
 0x3e1   : > { %2021 = vmatpush3.msra.mxu0 %v1265_v21 }
 0x3e2   : > { %2022 = vmatprep.subr.mxu0 %v1264_v24  ;;  %1342 = vmatmul.mubr.f32.gmra.mxu0 %v2638_v8 }
 0x3e3   : > { %1416 = vmatmul.mubr.f32.gmra.mxu1 %v1177_v28  ;;  %2023 = vmatpush3.msra.mxu0 %v1264_v24 }
 0x3e4   : > { %2024 = vmatprep.subr.mxu0 %v1263_v26  ;;  %2050 = vmatprep.mubr.f32.mxu0 %v1184_v29 }
 0x3e5   : > { %2025 = vmatpush3.msra.mxu0 %v1263_v26 }
 0x3e6   : > { %2026 = vmatprep.subr.mxu0 %v1262_v30 }
 0x3e7   : > { %2027 = vmatpush3.msra.mxu0 %v1262_v30 }
 0x3e8   : > { %2028 = vmatprep.subr.mxu0 %v1261_v31 }
 0x3e9   : > { %2029 = vmatpush3.msra.mxu0 %v1261_v31 }
 0x3ea   : > { %2030 = vmatprep.subr.mxu0 %v1260_v32 }
 0x3eb   : > { %2031 = vmatpush3.msra.mxu0 %v1260_v32 }
 0x3ec   : > { %2032 = vmatprep.subr.mxu0 %v1259_v33 }
 0x3ed   : > { %2033 = vmatpush3.msra.mxu0 %v1259_v33 }
 0x3ee   : > { %2034 = vmatprep.subr.mxu0 %v1258_v34 }
 0x3ef   : > { %2035 = vmatpush3.msra.mxu0 %v1258_v34 }
 0x3f0   : > { %2036 = vmatprep.subr.mxu0 %v1257_v35 }
 0x3f1   : > { %2037 = vmatpush3.msra.mxu0 %v1257_v35 }
 0x3f2   : > { %2038 = vmatprep.subr.mxu0 %v1256_v36 }
 0x3f3   : > { %2039 = vmatpush3.msra.mxu0 %v1256_v36 }
 0x3f4   : > { %2040 = vmatprep.subr.mxu0 %v1255_v37 }
 0x3f5   : > { %2041 = vmatpush3.msra.mxu0 %v1255_v37 }
 0x3f6   : > { %2042 = vmatprep.subr.mxu0 %v1254_v39 }
 0x3f7   : > { %2043 = vmatpush3.msra.mxu0 %v1254_v39 }
 0x3f8   : > { %2044 = vmatprep.subr.mxu0 %v1253_v40 }
 0x3f9   : > { %2045 = vmatpush3.msra.mxu0 %v1253_v40 }
 0x3fa   : > { %2046 = vmatprep.subr.mxu0 %v1252_v41 }
 0x3fb   : > { %2047 = vmatpush3.msra.mxu0 %v1252_v41 }
 0x3fc   : > { %2048 = vmatprep.subr.mxu0 %v1251_v42 }
 0x3fd   : > { %2049 = vmatpush3.msra.mxu0 %v1251_v42 }
 0x3fe   : > { %2051 = vmatmul.mubr.f32.vlgmr.msra.gmra.mxu0 %v1185_v43 }
 0x49e   : > { %v1872_v44 = vpop.f32.mrf.mxu0  ;;  %v1910_v45 = vpop.f32.mrf.mxu1 }
 0x4a0   : > { %v1873_v46 = vpop.f32.mrf.mxu0  ;;  %v1911_v47 = vpop.f32.mrf.mxu1 }
 0x4a1   : > { %v1874_v52 = vadd.f32 %v1873_v46, %v1872_v44  ;;  %v1912_v20 = vadd.f32 %v1911_v47, %v1910_v45 }
 0x4a2   : > { %v1875_v48 = vpop.f32.mrf.mxu0 }
 0x4a3   : > { %v1913_v49 = vpop.f32.mrf.mxu1  ;;  %v1339_v54 = vadd.f32 %v1874_v52, %v1639_v53 }
 0x4a4   : > { %v1876_v50 = vpop.f32.mrf.mxu0 }
 0x4a5   : > { %v1914_v51 = vpop.f32.mrf.mxu1  ;;  %v1413_v56 = vadd.f32 %v1912_v20, %v1339_v54 }
 0x4be   : > { %v2052_v55 = vpop.f32.mrf.mxu0 }
 0x4c0   : > { %v1486_v57 = vpop.f32.mrf.mxu0 }
 0x4c1   : > { %v1487_v58 = vadd.f32 %v1486_v57, %v1413_v56 }
 0x4c3   : > { %v1494_v59 = vmax.f32 %v1487_v58, 0.0 }
 0x4c5   : > { %v1498_v60 = vadd.f32 %v1494_v59, %v2592_v38 }
 0x4c7   : > { %1499 = vst [vmem:[%s326_s20] sm:$0x1] %v1498_v60 }
 0x4c8   : > { %2287 = shalt.err (!%p2284_p5)
}
 0x4c9   : > { %s2288_s10 = scalar_lea.hbm %s1511_s15, 16  ;;  %s2292_s13 = scalar_lea.hbm %s2714_s6, 32 }
 0x4ca   : > { %p2289_p6 = scmp.ne.s32.totalorder %s1511_s15, %s2288_s10  ;;  %p2293_p9 = scmp.lt.s32.totalorder %s1511_s15, %s2714_s6 }
 0x4cb   : > { %p2294_p2 = scmp.lt.s32.totalorder %s2292_s13, %s2288_s10 }
 0x4cc   : > { %p2290_p4 = pnand %p2289_p6, %p2735_p12 }
 0x4cd   : > { %p2295_p3 = por %p2294_p2, %p2293_p9 }
 0x4ce   : > { %p2291_p8 = pneg %p2290_p4 }
 0x4d0   : > { %p2296_p10 = pnand %p2295_p3, %p2291_p8 }
 0x4d2   : > { %2299 = shalt.err (!%p2296_p10)
}
 0x4d3   : > { %2071 = dma.vmem_to_hbm [thread:$0]  (%p2735_p12), %s1514_s30, 16, %s1511_s15, %s1501_s26  }
 0x4d4 PF: > { %s1525_s20 = sand.u32 1, %s2334_s21   ;;  %p2736_p7 = scmp.ne.s32.totalorder %s2722_s28, 0 }
 0x4d5   : > { %p2737_p1 = scmp.ge.s32.totalorder %s2346_s24, 2  ;;  %s1526_s17 = scalar_lea.sflag [#allocation4], %s1525_s20 }
 0x4d7   : > { %p2091_p13 = pnand %p2737_p1, %p2736_p7 }
 0x4d9   : > { %p2092_p0 = pneg %p2091_p13 }
 0x4db   : > { %2329 = dma.done.wait (%p2092_p0), %s1526_s17, 16  }
 0x4dc   : > { %2331 = vsyncadd (%p2092_p0), %s1526_s17, 4294967280  ;;  %p21_p11 = scmp.ge.s32.totalorder %s2491_s16, 4   ;;  %s2738_s21 = smov %s2338_s22 }
 0x4dd   : > { %s2739_s22 = smov %s2342_s23  ;;  %s2740_s23 = smov %s2507_s19 }
 0x4de   : > { %s2741_s24 = smov %s2491_s16  ;;  %23 = sbr.rel (!%p21_p11) target bundleno = 7 (0x7), region = 108 }
 0x4e3   :  { %1530 = vsyncpa [#allocation3], 1 }
 0x4e4   :  { %1532 = vsyncpa [#allocation3 + $0x1], 1 }
 0x4e5   :  { %1533 = vsyncpa [#allocation6], 1 }
 0x4e6   :  { %1534 = vsyncpa [#allocation9], 1 }
 0x4e7   :  { %1535 = vsyncpa [#allocation4], 1 }
 0x4e8   :  { %1537 = vsyncpa [#allocation4 + $0x1], 1 }

</bundles_post_ra>
